<compile_context>
chip_gen: v7x
topology: tpu7x:2x2x1
jax: 0.10.0
libtpu: 0.0.40
codegen_flags: <defaults>
</compile_context>

<pallas_src>
import math

import jax
import jax.numpy as jnp
from jax.experimental import pallas as pl
from jax.experimental.pallas import tpu as pltpu

# ---- model hyper-parameters (small, consistent with the module) ----
VOCAB = 100
VOCAB_PAD = 128          # padded to one full lane width for the one-hot MXU gather
DIM = 32                 # encoder.dim
HEADS = 4
HEAD_DIM = DIM // HEADS
FFN = 64
LAYERS = 2
EPS = 1e-5               # PyTorch LayerNorm default eps
BATCH = 2
SEQ = 8

# Row indices inside the packed per-layer vector slab (LAYERS, 8, 128).
_R_BQKV, _R_BO, _R_G1, _R_BE1, _R_BF1, _R_BF2, _R_G2, _R_BE2 = range(8)
# Plane indices inside the packed per-layer weight slab (LAYERS, 3, DIM, 128).
_P_WQKV, _P_WO, _P_W1 = range(3)


# ------------------------------------------------------------------
# Shared math helper (used both in-kernel and by the pure-JAX reference)
# ------------------------------------------------------------------
def _layer_norm(x, g, b):
    mu = jnp.mean(x, axis=-1, keepdims=True)
    var = jnp.mean(jnp.square(x - mu), axis=-1, keepdims=True)
    return (x - mu) * jax.lax.rsqrt(var + EPS) * g + b


# ------------------------------------------------------------------
# Fused Pallas kernel: one-hot embedding gather + pos-enc + full encoder stack
# ------------------------------------------------------------------
def _make_fused_kernel(B, S):
    N = B * S
    scale = 1.0 / math.sqrt(HEAD_DIM)

    def kernel(ids_ref,        # (N, 1) int32 token ids (VMEM)
               emb_ref,        # (VOCAB_PAD, D) zero-padded embedding table
               pe_ref,         # (N, D) sinusoidal positional encoding
               wcat_ref,       # (LAYERS, 3, D, 128) packed {wqkv | wo | w1}
               w2_ref,         # (LAYERS, 128, D) zero-row-padded FFN second matmul
               vecs_ref,       # (LAYERS, 8, 128) packed bias / LayerNorm slab
               o_ref):         # (N, D) output
        # ---- embedding lookup as a one-hot MXU matmul (exact: 1.0 * row) ----
        ids = ids_ref[...]                                              # (N, 1)
        iota = jax.lax.broadcasted_iota(jnp.int32, (N, VOCAB_PAD), 1)
        onehot = (iota == ids).astype(jnp.float32)                      # (N, 128)
        x = jnp.dot(onehot, emb_ref[...],
                    preferred_element_type=jnp.float32) + pe_ref[...]   # (N, D)

        # ---- encoder stack (post-LN, ReLU FFN), statically unrolled ----
        for l in range(LAYERS):
            vec = vecs_ref[l]                            # (8, 128) packed vectors
            b_qkv = vec[_R_BQKV:_R_BQKV + 1, :]          # full row (zero-padded past 3D)
            b_o   = vec[_R_BO:_R_BO + 1, :DIM]
            g1    = vec[_R_G1:_R_G1 + 1, :DIM]
            be1   = vec[_R_BE1:_R_BE1 + 1, :DIM]
            bf1   = vec[_R_BF1:_R_BF1 + 1, :]            # full row (zero-padded past FFN)
            bf2   = vec[_R_BF2:_R_BF2 + 1, :DIM]
            g2    = vec[_R_G2:_R_G2 + 1, :DIM]
            be2   = vec[_R_BE2:_R_BE2 + 1, :DIM]

            wqkv_p = wcat_ref[l, _P_WQKV]                # (D, 128) head-major, zero-padded
            wo32   = wcat_ref[l, _P_WO, :, :DIM]         # (D, D)
            w1_p   = wcat_ref[l, _P_W1]                  # (D, 128) zero-padded past FFN

            # --- fused QKV projection: single (N,D) @ (D,128) matmul ---
            qkv = jnp.dot(x, wqkv_p,
                          preferred_element_type=jnp.float32) + b_qkv   # (N, 128)
            qkv_b = qkv.reshape(B, S, 128)               # leading-dim split, layout unchanged

            # --- multi-head self attention; head concat folded into Wo ---
            attn = jnp.zeros((N, DIM), jnp.float32)
            for h in range(HEADS):                       # static unroll over 4 heads
                base = h * 3 * HEAD_DIM                  # contiguous 24-lane chunk per head
                q = qkv_b[:, :, base:base + HEAD_DIM]
                k = qkv_b[:, :, base + HEAD_DIM:base + 2 * HEAD_DIM]
                v = qkv_b[:, :, base + 2 * HEAD_DIM:base + 3 * HEAD_DIM]
                s = jnp.einsum("bqd,bkd->bqk", q, k,
                               preferred_element_type=jnp.float32) * scale
                s = s - jnp.max(s, axis=-1, keepdims=True)
                p = jnp.exp(s)
                p = p * pl.reciprocal(jnp.sum(p, axis=-1, keepdims=True),
                                      approx=True)
                ctx_h = jnp.einsum("bqk,bkd->bqd", p, v,
                                   preferred_element_type=jnp.float32
                                   ).reshape(N, HEAD_DIM)
                wo_h = wo32[h * HEAD_DIM:(h + 1) * HEAD_DIM, :]          # (8, D)
                attn = attn + jnp.dot(ctx_h, wo_h,
                                      preferred_element_type=jnp.float32)

            # --- residual + LayerNorm, ReLU FFN, residual + LayerNorm ---
            y = _layer_norm(x + attn + b_o, g1, be1)
            hmid = jnp.maximum(
                jnp.dot(y, w1_p, preferred_element_type=jnp.float32) + bf1, 0.0)
            # lanes >= FFN of hmid are exactly 0 (zero weight cols + zero bias), and
            # the matching rows of w2 are zero, so no lane slicing is needed.
            f = jnp.dot(hmid, w2_ref[l], preferred_element_type=jnp.float32) + bf2
            x = _layer_norm(y + f, g2, be2)

        o_ref[...] = x

    return kernel


# ------------------------------------------------------------------
# Wrapper: single pallas_call (no grid — everything resident in VMEM)
# ------------------------------------------------------------------
def nlp_transformer_forward(src_ids, params):
    B, S = src_ids.shape
    N = B * S
    ids2d = src_ids.reshape(N, 1).astype(jnp.int32)

    out2d = pl.pallas_call(
        _make_fused_kernel(B, S),
        out_shape=jax.ShapeDtypeStruct((N, DIM), jnp.float32),
    )(ids2d, params["emb_pad"], params["pe"], params["wcat"],
      params["w2"], params["vecs"])
    return out2d.reshape(B, S, DIM)


# ------------------------------------------------------------------
# Parameter construction (deterministic, in-script) + packing
# ------------------------------------------------------------------
def sin_pos_encoding_table(B, S, D):
    pos = jnp.arange(S, dtype=jnp.float32)[:, None]
    i = jnp.arange(0, D, 2, dtype=jnp.float32)[None, :]
    div = jnp.exp(-i * (math.log(10000.0) / D))
    pe = jnp.zeros((S, D), jnp.float32)
    pe = pe.at[:, 0::2].set(jnp.sin(pos * div))
    pe = pe.at[:, 1::2].set(jnp.cos(pos * div))
    return jnp.tile(pe, (B, 1))                          # (B*S, D), row-major (b, s)


def init_params(key):
    ks = jax.random.split(key, 1 + LAYERS * 12)
    std = 0.02
    emb = jax.random.normal(ks[0], (VOCAB, DIM), jnp.float32) * std
    raw_layers = []
    for l in range(LAYERS):
        k = ks[1 + 12 * l: 1 + 12 * (l + 1)]
        raw_layers.append(dict(
            wq=jax.random.normal(k[0], (DIM, DIM), jnp.float32) * std,
            wk=jax.random.normal(k[1], (DIM, DIM), jnp.float32) * std,
            wv=jax.random.normal(k[2], (DIM, DIM), jnp.float32) * std,
            wo=jax.random.normal(k[3], (DIM, DIM), jnp.float32) * std,
            w1=jax.random.normal(k[4], (DIM, FFN), jnp.float32) * std,
            w2=jax.random.normal(k[5], (FFN, DIM), jnp.float32) * std,
            bq=jax.random.normal(k[6], (1, DIM), jnp.float32) * std,
            bk=jax.random.normal(k[7], (1, DIM), jnp.float32) * std,
            bv=jax.random.normal(k[8], (1, DIM), jnp.float32) * std,
            bo=jax.random.normal(k[9], (1, DIM), jnp.float32) * std,
            b1=jax.random.normal(k[10], (1, FFN), jnp.float32) * std,
            b2=jax.random.normal(k[11], (1, DIM), jnp.float32) * std,
            g1=jnp.ones((1, DIM), jnp.float32),
            be1=jnp.zeros((1, DIM), jnp.float32),
            g2=jnp.ones((1, DIM), jnp.float32),
            be2=jnp.zeros((1, DIM), jnp.float32),
        ))
    return emb, raw_layers


def pack_params(emb, raw_layers, B, S):
    # Zero-pad the embedding table to 128 rows for the one-hot MXU gather.
    emb_pad = jnp.zeros((VOCAB_PAD, DIM), jnp.float32).at[:VOCAB].set(emb)

    wcat, w2, vecs = [], [], []
    for r in raw_layers:
        # Head-major QKV columns: per head h, [q_h | k_h | v_h] contiguous.
        cols, bcols = [], []
        for h in range(HEADS):
            sl = slice(h * HEAD_DIM, (h + 1) * HEAD_DIM)
            cols += [r["wq"][:, sl], r["wk"][:, sl], r["wv"][:, sl]]
            bcols += [r["bq"][0, sl], r["bk"][0, sl], r["bv"][0, sl]]
        wqkv_hm = jnp.concatenate(cols, axis=1)          # (D, 3D) head-major
        bqkv_hm = jnp.concatenate(bcols, axis=0)         # (3D,)

        plane = jnp.zeros((3, DIM, 128), jnp.float32)
        plane = plane.at[_P_WQKV, :, :3 * DIM].set(wqkv_hm)
        plane = plane.at[_P_WO, :, :DIM].set(r["wo"])
        plane = plane.at[_P_W1, :, :FFN].set(r["w1"])
        wcat.append(plane)

        w2.append(jnp.zeros((128, DIM), jnp.float32).at[:FFN].set(r["w2"]))

        v = jnp.zeros((8, 128), jnp.float32)
        v = v.at[_R_BQKV, :3 * DIM].set(bqkv_hm)
        v = v.at[_R_BO, :DIM].set(r["bo"][0])
        v = v.at[_R_G1, :DIM].set(r["g1"][0])
        v = v.at[_R_BE1, :DIM].set(r["be1"][0])
        v = v.at[_R_BF1, :FFN].set(r["b1"][0])
        v = v.at[_R_BF2, :DIM].set(r["b2"][0])
        v = v.at[_R_G2, :DIM].set(r["g2"][0])
        v = v.at[_R_BE2, :DIM].set(r["be2"][0])
        vecs.append(v)

    return dict(emb_pad=emb_pad,
                wcat=jnp.stack(wcat),                    # (L, 3, D, 128)
                w2=jnp.stack(w2),                        # (L, 128, D)
                vecs=jnp.stack(vecs),                    # (L, 8, 128)
                pe=sin_pos_encoding_table(B, S, DIM))    # (B*S, D)


# ------------------------------------------------------------------
# Pure-JAX reference (uses the UNPACKED weights -> validates packing too)
# ------------------------------------------------------------------
def reference_forward(src_ids, emb, raw_layers, pe2d):
    B, S = src_ids.shape
    x = jnp.take(emb, src_ids.reshape(-1), axis=0) + pe2d            # (B*S, D)
    scale = 1.0 / math.sqrt(HEAD_DIM)
    for r in raw_layers:
        q = (x @ r["wq"] + r["bq"]).reshape(B, S, HEADS, HEAD_DIM)
        k = (x @ r["wk"] + r["bk"]).reshape(B, S, HEADS, HEAD_DIM)
        v = (x @ r["wv"] + r["bv"]).reshape(B, S, HEADS, HEAD_DIM)
        s = jnp.einsum("bqhd,bkhd->bhqk", q, k) * scale
        p = jax.nn.softmax(s, axis=-1)
        ctx = jnp.einsum("bhqk,bkhd->bqhd", p, v).reshape(B * S, DIM)
        attn = ctx @ r["wo"] + r["bo"]
        y = _layer_norm(x + attn, r["g1"], r["be1"])
        h = jax.nn.relu(y @ r["w1"] + r["b1"])
        f = h @ r["w2"] + r["b2"]
        x = _layer_norm(y + f, r["g2"], r["be2"])
    return x.reshape(B, S, DIM)


# TODO(synk): the tokenizer/padding branch of NLPTransformer.forward (host-side
# HuggingFace string tokenization) has no Pallas equivalent; only the
# tokenizer=None, decoder=None path is implemented.


if __name__ == "__main__":
    root = jax.random.PRNGKey(0)
    k_params, k_ids = jax.random.split(root)

    emb, raw_layers = init_params(k_params)
    params = pack_params(emb, raw_layers, BATCH, SEQ)

    src_ids = jax.random.randint(k_ids, (BATCH, SEQ), 0, VOCAB, dtype=jnp.int32)

    out = nlp_transformer_forward(src_ids, params)
    out = jax.block_until_ready(out)

    ref = reference_forward(src_ids, emb, raw_layers, params["pe"])

    assert out.shape == (BATCH, SEQ, DIM)
    assert bool(jnp.all(jnp.isfinite(out)))
    assert bool(jnp.allclose(out, ref, atol=2e-2, rtol=2e-2)), (
        "max abs diff = %f" % float(jnp.max(jnp.abs(out - ref))))
    print("KERNEL_OK")
</pallas_src>

<mosaic_0001>
module attributes {stable_mosaic.version = 11 : i64} {
  func.func @kernel(%arg0: memref<16x1xi32, #tpu.memory_space<vmem>>, %arg1: memref<128x32xf32, #tpu.memory_space<vmem>>, %arg2: memref<16x32xf32, #tpu.memory_space<vmem>>, %arg3: memref<2x3x32x128xf32, #tpu.memory_space<vmem>>, %arg4: memref<2x128x32xf32, #tpu.memory_space<vmem>>, %arg5: memref<2x8x128xf32, #tpu.memory_space<vmem>>, %arg6: memref<16x32xf32, #tpu.memory_space<vmem>>) attributes {dimension_semantics = [], scalar_prefetch = 0 : i64, scratch_operands = 0 : i64, tpu.core_type = #tpu.core_type<tc>} {
    %c0 = arith.constant 0 : index
    %c0_0 = arith.constant 0 : index
    %0 = vector.load %arg0[%c0, %c0_0] : memref<16x1xi32, #tpu.memory_space<vmem>>, vector<16x1xi32>
    %1 = tpu.iota {dimensions = array<i32: 1>} : vector<16x128xi32>
    %2 = vector.broadcast %0 : vector<16x1xi32> to vector<16x128xi32>
    %3 = arith.cmpi eq, %1, %2 : vector<16x128xi32>
    %4 = arith.extui %3 : vector<16x128xi1> to vector<16x128xi32>
    %5 = arith.sitofp %4 : vector<16x128xi32> to vector<16x128xf32>
    %c0_1 = arith.constant 0 : index
    %c0_2 = arith.constant 0 : index
    %6 = vector.load %arg1[%c0_1, %c0_2] : memref<128x32xf32, #tpu.memory_space<vmem>>, vector<128x32xf32>
    %cst = arith.constant dense<0.000000e+00> : vector<16x32xf32>
    %7 = tpu.matmul %5, %6, %cst {dimension_numbers = #tpu.dot_dimension_numbers<[1], [0], [0], [1], [0, 0, 1, 1], [], []>} : vector<16x128xf32>, vector<128x32xf32>, vector<16x32xf32> -> vector<16x32xf32>
    %c0_3 = arith.constant 0 : index
    %c0_4 = arith.constant 0 : index
    %8 = vector.load %arg2[%c0_3, %c0_4] : memref<16x32xf32, #tpu.memory_space<vmem>>, vector<16x32xf32>
    %9 = arith.addf %7, %8 : vector<16x32xf32>
    %c0_5 = arith.constant 0 : index
    %c0_6 = arith.constant 0 : index
    %c0_7 = arith.constant 0 : index
    %10 = vector.load %arg5[%c0_5, %c0_6, %c0_7] : memref<2x8x128xf32, #tpu.memory_space<vmem>>, vector<1x8x128xf32>
    %11 = vector.shape_cast %10 : vector<1x8x128xf32> to vector<8x128xf32>
    %12 = vector.extract_strided_slice %11 {offsets = [0, 0], sizes = [1, 128], strides = [1, 1]} : vector<8x128xf32> to vector<1x128xf32>
    %13 = vector.extract_strided_slice %11 {offsets = [1, 0], sizes = [1, 32], strides = [1, 1]} : vector<8x128xf32> to vector<1x32xf32>
    %14 = vector.extract_strided_slice %11 {offsets = [2, 0], sizes = [1, 32], strides = [1, 1]} : vector<8x128xf32> to vector<1x32xf32>
    %15 = vector.extract_strided_slice %11 {offsets = [3, 0], sizes = [1, 32], strides = [1, 1]} : vector<8x128xf32> to vector<1x32xf32>
    %16 = vector.extract_strided_slice %11 {offsets = [4, 0], sizes = [1, 128], strides = [1, 1]} : vector<8x128xf32> to vector<1x128xf32>
    %17 = vector.extract_strided_slice %11 {offsets = [5, 0], sizes = [1, 32], strides = [1, 1]} : vector<8x128xf32> to vector<1x32xf32>
    %18 = vector.extract_strided_slice %11 {offsets = [6, 0], sizes = [1, 32], strides = [1, 1]} : vector<8x128xf32> to vector<1x32xf32>
    %19 = vector.extract_strided_slice %11 {offsets = [7, 0], sizes = [1, 32], strides = [1, 1]} : vector<8x128xf32> to vector<1x32xf32>
    %c0_8 = arith.constant 0 : index
    %c0_9 = arith.constant 0 : index
    %c0_10 = arith.constant 0 : index
    %c0_11 = arith.constant 0 : index
    %20 = vector.load %arg3[%c0_8, %c0_9, %c0_10, %c0_11] : memref<2x3x32x128xf32, #tpu.memory_space<vmem>>, vector<1x1x32x128xf32>
    %21 = vector.shape_cast %20 : vector<1x1x32x128xf32> to vector<32x128xf32>
    %c0_12 = arith.constant 0 : index
    %c1 = arith.constant 1 : index
    %c0_13 = arith.constant 0 : index
    %c0_14 = arith.constant 0 : index
    %22 = vector.load %arg3[%c0_12, %c1, %c0_13, %c0_14] : memref<2x3x32x128xf32, #tpu.memory_space<vmem>>, vector<1x1x32x32xf32>
    %23 = vector.shape_cast %22 : vector<1x1x32x32xf32> to vector<32x32xf32>
    %c0_15 = arith.constant 0 : index
    %c2 = arith.constant 2 : index
    %c0_16 = arith.constant 0 : index
    %c0_17 = arith.constant 0 : index
    %24 = vector.load %arg3[%c0_15, %c2, %c0_16, %c0_17] : memref<2x3x32x128xf32, #tpu.memory_space<vmem>>, vector<1x1x32x128xf32>
    %25 = vector.shape_cast %24 : vector<1x1x32x128xf32> to vector<32x128xf32>
    %cst_18 = arith.constant dense<0.000000e+00> : vector<16x128xf32>
    %26 = tpu.matmul %9, %21, %cst_18 {dimension_numbers = #tpu.dot_dimension_numbers<[1], [0], [0], [1], [0, 0, 1, 1], [], []>} : vector<16x32xf32>, vector<32x128xf32>, vector<16x128xf32> -> vector<16x128xf32>
    %27 = vector.broadcast %12 : vector<1x128xf32> to vector<16x128xf32>
    %28 = arith.addf %26, %27 : vector<16x128xf32>
    %29 = vector.shape_cast %28 : vector<16x128xf32> to vector<2x8x128xf32>
    %cst_19 = arith.constant 0.000000e+00 : f32
    %30 = vector.broadcast %cst_19 : f32 to vector<16x32xf32>
    %31 = vector.extract_strided_slice %29 {offsets = [0, 0, 0], sizes = [2, 8, 8], strides = [1, 1, 1]} : vector<2x8x128xf32> to vector<2x8x8xf32>
    %32 = vector.extract_strided_slice %29 {offsets = [0, 0, 8], sizes = [2, 8, 8], strides = [1, 1, 1]} : vector<2x8x128xf32> to vector<2x8x8xf32>
    %33 = vector.extract_strided_slice %29 {offsets = [0, 0, 16], sizes = [2, 8, 8], strides = [1, 1, 1]} : vector<2x8x128xf32> to vector<2x8x8xf32>
    "tpu.trace_start"() <{level = 10 : i32, message = "bqd,bkd->bqk"}> : () -> ()
    %cst_20 = arith.constant dense<0.000000e+00> : vector<2x8x8xf32>
    %34 = tpu.matmul %31, %32, %cst_20 {dimension_numbers = #tpu.dot_dimension_numbers<[2], [2], [1], [1], [0, 0, 0, 1, 1, 1], [0], [0]>} : vector<2x8x8xf32>, vector<2x8x8xf32>, vector<2x8x8xf32> -> vector<2x8x8xf32>
    "tpu.trace_stop"() : () -> ()
    %cst_21 = arith.constant 0.353553385 : f32
    %35 = vector.broadcast %cst_21 : f32 to vector<2x8x8xf32>
    %36 = arith.mulf %34, %35 : vector<2x8x8xf32>
    %cst_22 = arith.constant dense<0xFF800000> : vector<2x8xf32>
    %37 = vector.multi_reduction <maximumf>, %36, %cst_22 [2] : vector<2x8x8xf32> to vector<2x8xf32>
    %38 = vector.shape_cast %37 : vector<2x8xf32> to vector<2x8x1xf32>
    %39 = vector.broadcast %38 : vector<2x8x1xf32> to vector<2x8x8xf32>
    %40 = arith.subf %36, %39 : vector<2x8x8xf32>
    %41 = math.exp %40 : vector<2x8x8xf32>
    %cst_23 = arith.constant dense<0.000000e+00> : vector<2x8xf32>
    %42 = vector.multi_reduction <add>, %41, %cst_23 [2] : vector<2x8x8xf32> to vector<2x8xf32>
    %43 = vector.shape_cast %42 : vector<2x8xf32> to vector<2x8x1xf32>
    %44 = tpu.reciprocal %43 {approx = true} : vector<2x8x1xf32> -> vector<2x8x1xf32>
    %45 = vector.broadcast %44 : vector<2x8x1xf32> to vector<2x8x8xf32>
    %46 = arith.mulf %41, %45 : vector<2x8x8xf32>
    "tpu.trace_start"() <{level = 10 : i32, message = "bqk,bkd->bqd"}> : () -> ()
    %cst_24 = arith.constant dense<0.000000e+00> : vector<2x8x8xf32>
    %47 = tpu.matmul %46, %33, %cst_24 {dimension_numbers = #tpu.dot_dimension_numbers<[2], [1], [1], [2], [0, 0, 0, 1, 1, 2], [0], [0]>} : vector<2x8x8xf32>, vector<2x8x8xf32>, vector<2x8x8xf32> -> vector<2x8x8xf32>
    "tpu.trace_stop"() : () -> ()
    %48 = vector.shape_cast %47 : vector<2x8x8xf32> to vector<16x8xf32>
    %49 = vector.extract_strided_slice %23 {offsets = [0, 0], sizes = [8, 32], strides = [1, 1]} : vector<32x32xf32> to vector<8x32xf32>
    %cst_25 = arith.constant dense<0.000000e+00> : vector<16x32xf32>
    %50 = tpu.matmul %48, %49, %cst_25 {dimension_numbers = #tpu.dot_dimension_numbers<[1], [0], [0], [1], [0, 0, 1, 1], [], []>} : vector<16x8xf32>, vector<8x32xf32>, vector<16x32xf32> -> vector<16x32xf32>
    %51 = arith.addf %30, %50 : vector<16x32xf32>
    %52 = vector.extract_strided_slice %29 {offsets = [0, 0, 24], sizes = [2, 8, 8], strides = [1, 1, 1]} : vector<2x8x128xf32> to vector<2x8x8xf32>
    %53 = vector.extract_strided_slice %29 {offsets = [0, 0, 32], sizes = [2, 8, 8], strides = [1, 1, 1]} : vector<2x8x128xf32> to vector<2x8x8xf32>
    %54 = vector.extract_strided_slice %29 {offsets = [0, 0, 40], sizes = [2, 8, 8], strides = [1, 1, 1]} : vector<2x8x128xf32> to vector<2x8x8xf32>
    "tpu.trace_start"() <{level = 10 : i32, message = "bqd,bkd->bqk"}> : () -> ()
    %cst_26 = arith.constant dense<0.000000e+00> : vector<2x8x8xf32>
    %55 = tpu.matmul %52, %53, %cst_26 {dimension_numbers = #tpu.dot_dimension_numbers<[2], [2], [1], [1], [0, 0, 0, 1, 1, 1], [0], [0]>} : vector<2x8x8xf32>, vector<2x8x8xf32>, vector<2x8x8xf32> -> vector<2x8x8xf32>
    "tpu.trace_stop"() : () -> ()
    %cst_27 = arith.constant 0.353553385 : f32
    %56 = vector.broadcast %cst_27 : f32 to vector<2x8x8xf32>
    %57 = arith.mulf %55, %56 : vector<2x8x8xf32>
    %cst_28 = arith.constant dense<0xFF800000> : vector<2x8xf32>
    %58 = vector.multi_reduction <maximumf>, %57, %cst_28 [2] : vector<2x8x8xf32> to vector<2x8xf32>
    %59 = vector.shape_cast %58 : vector<2x8xf32> to vector<2x8x1xf32>
    %60 = vector.broadcast %59 : vector<2x8x1xf32> to vector<2x8x8xf32>
    %61 = arith.subf %57, %60 : vector<2x8x8xf32>
    %62 = math.exp %61 : vector<2x8x8xf32>
    %cst_29 = arith.constant dense<0.000000e+00> : vector<2x8xf32>
    %63 = vector.multi_reduction <add>, %62, %cst_29 [2] : vector<2x8x8xf32> to vector<2x8xf32>
    %64 = vector.shape_cast %63 : vector<2x8xf32> to vector<2x8x1xf32>
    %65 = tpu.reciprocal %64 {approx = true} : vector<2x8x1xf32> -> vector<2x8x1xf32>
    %66 = vector.broadcast %65 : vector<2x8x1xf32> to vector<2x8x8xf32>
    %67 = arith.mulf %62, %66 : vector<2x8x8xf32>
    "tpu.trace_start"() <{level = 10 : i32, message = "bqk,bkd->bqd"}> : () -> ()
    %cst_30 = arith.constant dense<0.000000e+00> : vector<2x8x8xf32>
    %68 = tpu.matmul %67, %54, %cst_30 {dimension_numbers = #tpu.dot_dimension_numbers<[2], [1], [1], [2], [0, 0, 0, 1, 1, 2], [0], [0]>} : vector<2x8x8xf32>, vector<2x8x8xf32>, vector<2x8x8xf32> -> vector<2x8x8xf32>
    "tpu.trace_stop"() : () -> ()
    %69 = vector.shape_cast %68 : vector<2x8x8xf32> to vector<16x8xf32>
    %70 = vector.extract_strided_slice %23 {offsets = [8, 0], sizes = [8, 32], strides = [1, 1]} : vector<32x32xf32> to vector<8x32xf32>
    %cst_31 = arith.constant dense<0.000000e+00> : vector<16x32xf32>
    %71 = tpu.matmul %69, %70, %cst_31 {dimension_numbers = #tpu.dot_dimension_numbers<[1], [0], [0], [1], [0, 0, 1, 1], [], []>} : vector<16x8xf32>, vector<8x32xf32>, vector<16x32xf32> -> vector<16x32xf32>
    %72 = arith.addf %51, %71 : vector<16x32xf32>
    %73 = vector.extract_strided_slice %29 {offsets = [0, 0, 48], sizes = [2, 8, 8], strides = [1, 1, 1]} : vector<2x8x128xf32> to vector<2x8x8xf32>
    %74 = vector.extract_strided_slice %29 {offsets = [0, 0, 56], sizes = [2, 8, 8], strides = [1, 1, 1]} : vector<2x8x128xf32> to vector<2x8x8xf32>
    %75 = vector.extract_strided_slice %29 {offsets = [0, 0, 64], sizes = [2, 8, 8], strides = [1, 1, 1]} : vector<2x8x128xf32> to vector<2x8x8xf32>
    "tpu.trace_start"() <{level = 10 : i32, message = "bqd,bkd->bqk"}> : () -> ()
    %cst_32 = arith.constant dense<0.000000e+00> : vector<2x8x8xf32>
    %76 = tpu.matmul %73, %74, %cst_32 {dimension_numbers = #tpu.dot_dimension_numbers<[2], [2], [1], [1], [0, 0, 0, 1, 1, 1], [0], [0]>} : vector<2x8x8xf32>, vector<2x8x8xf32>, vector<2x8x8xf32> -> vector<2x8x8xf32>
    "tpu.trace_stop"() : () -> ()
    %cst_33 = arith.constant 0.353553385 : f32
    %77 = vector.broadcast %cst_33 : f32 to vector<2x8x8xf32>
    %78 = arith.mulf %76, %77 : vector<2x8x8xf32>
    %cst_34 = arith.constant dense<0xFF800000> : vector<2x8xf32>
    %79 = vector.multi_reduction <maximumf>, %78, %cst_34 [2] : vector<2x8x8xf32> to vector<2x8xf32>
    %80 = vector.shape_cast %79 : vector<2x8xf32> to vector<2x8x1xf32>
    %81 = vector.broadcast %80 : vector<2x8x1xf32> to vector<2x8x8xf32>
    %82 = arith.subf %78, %81 : vector<2x8x8xf32>
    %83 = math.exp %82 : vector<2x8x8xf32>
    %cst_35 = arith.constant dense<0.000000e+00> : vector<2x8xf32>
    %84 = vector.multi_reduction <add>, %83, %cst_35 [2] : vector<2x8x8xf32> to vector<2x8xf32>
    %85 = vector.shape_cast %84 : vector<2x8xf32> to vector<2x8x1xf32>
    %86 = tpu.reciprocal %85 {approx = true} : vector<2x8x1xf32> -> vector<2x8x1xf32>
    %87 = vector.broadcast %86 : vector<2x8x1xf32> to vector<2x8x8xf32>
    %88 = arith.mulf %83, %87 : vector<2x8x8xf32>
    "tpu.trace_start"() <{level = 10 : i32, message = "bqk,bkd->bqd"}> : () -> ()
    %cst_36 = arith.constant dense<0.000000e+00> : vector<2x8x8xf32>
    %89 = tpu.matmul %88, %75, %cst_36 {dimension_numbers = #tpu.dot_dimension_numbers<[2], [1], [1], [2], [0, 0, 0, 1, 1, 2], [0], [0]>} : vector<2x8x8xf32>, vector<2x8x8xf32>, vector<2x8x8xf32> -> vector<2x8x8xf32>
    "tpu.trace_stop"() : () -> ()
    %90 = vector.shape_cast %89 : vector<2x8x8xf32> to vector<16x8xf32>
    %91 = vector.extract_strided_slice %23 {offsets = [16, 0], sizes = [8, 32], strides = [1, 1]} : vector<32x32xf32> to vector<8x32xf32>
    %cst_37 = arith.constant dense<0.000000e+00> : vector<16x32xf32>
    %92 = tpu.matmul %90, %91, %cst_37 {dimension_numbers = #tpu.dot_dimension_numbers<[1], [0], [0], [1], [0, 0, 1, 1], [], []>} : vector<16x8xf32>, vector<8x32xf32>, vector<16x32xf32> -> vector<16x32xf32>
    %93 = arith.addf %72, %92 : vector<16x32xf32>
    %94 = vector.extract_strided_slice %29 {offsets = [0, 0, 72], sizes = [2, 8, 8], strides = [1, 1, 1]} : vector<2x8x128xf32> to vector<2x8x8xf32>
    %95 = vector.extract_strided_slice %29 {offsets = [0, 0, 80], sizes = [2, 8, 8], strides = [1, 1, 1]} : vector<2x8x128xf32> to vector<2x8x8xf32>
    %96 = vector.extract_strided_slice %29 {offsets = [0, 0, 88], sizes = [2, 8, 8], strides = [1, 1, 1]} : vector<2x8x128xf32> to vector<2x8x8xf32>
    "tpu.trace_start"() <{level = 10 : i32, message = "bqd,bkd->bqk"}> : () -> ()
    %cst_38 = arith.constant dense<0.000000e+00> : vector<2x8x8xf32>
    %97 = tpu.matmul %94, %95, %cst_38 {dimension_numbers = #tpu.dot_dimension_numbers<[2], [2], [1], [1], [0, 0, 0, 1, 1, 1], [0], [0]>} : vector<2x8x8xf32>, vector<2x8x8xf32>, vector<2x8x8xf32> -> vector<2x8x8xf32>
    "tpu.trace_stop"() : () -> ()
    %cst_39 = arith.constant 0.353553385 : f32
    %98 = vector.broadcast %cst_39 : f32 to vector<2x8x8xf32>
    %99 = arith.mulf %97, %98 : vector<2x8x8xf32>
    %cst_40 = arith.constant dense<0xFF800000> : vector<2x8xf32>
    %100 = vector.multi_reduction <maximumf>, %99, %cst_40 [2] : vector<2x8x8xf32> to vector<2x8xf32>
    %101 = vector.shape_cast %100 : vector<2x8xf32> to vector<2x8x1xf32>
    %102 = vector.broadcast %101 : vector<2x8x1xf32> to vector<2x8x8xf32>
    %103 = arith.subf %99, %102 : vector<2x8x8xf32>
    %104 = math.exp %103 : vector<2x8x8xf32>
    %cst_41 = arith.constant dense<0.000000e+00> : vector<2x8xf32>
    %105 = vector.multi_reduction <add>, %104, %cst_41 [2] : vector<2x8x8xf32> to vector<2x8xf32>
    %106 = vector.shape_cast %105 : vector<2x8xf32> to vector<2x8x1xf32>
    %107 = tpu.reciprocal %106 {approx = true} : vector<2x8x1xf32> -> vector<2x8x1xf32>
    %108 = vector.broadcast %107 : vector<2x8x1xf32> to vector<2x8x8xf32>
    %109 = arith.mulf %104, %108 : vector<2x8x8xf32>
    "tpu.trace_start"() <{level = 10 : i32, message = "bqk,bkd->bqd"}> : () -> ()
    %cst_42 = arith.constant dense<0.000000e+00> : vector<2x8x8xf32>
    %110 = tpu.matmul %109, %96, %cst_42 {dimension_numbers = #tpu.dot_dimension_numbers<[2], [1], [1], [2], [0, 0, 0, 1, 1, 2], [0], [0]>} : vector<2x8x8xf32>, vector<2x8x8xf32>, vector<2x8x8xf32> -> vector<2x8x8xf32>
    "tpu.trace_stop"() : () -> ()
    %111 = vector.shape_cast %110 : vector<2x8x8xf32> to vector<16x8xf32>
    %112 = vector.extract_strided_slice %23 {offsets = [24, 0], sizes = [8, 32], strides = [1, 1]} : vector<32x32xf32> to vector<8x32xf32>
    %cst_43 = arith.constant dense<0.000000e+00> : vector<16x32xf32>
    %113 = tpu.matmul %111, %112, %cst_43 {dimension_numbers = #tpu.dot_dimension_numbers<[1], [0], [0], [1], [0, 0, 1, 1], [], []>} : vector<16x8xf32>, vector<8x32xf32>, vector<16x32xf32> -> vector<16x32xf32>
    %114 = arith.addf %93, %113 : vector<16x32xf32>
    %115 = arith.addf %9, %114 : vector<16x32xf32>
    %116 = vector.broadcast %13 : vector<1x32xf32> to vector<16x32xf32>
    %117 = arith.addf %115, %116 : vector<16x32xf32>
    %cst_44 = arith.constant dense<0.000000e+00> : vector<16xf32>
    %118 = vector.multi_reduction <add>, %117, %cst_44 [1] : vector<16x32xf32> to vector<16xf32>
    %119 = vector.shape_cast %118 : vector<16xf32> to vector<16x1xf32>
    %cst_45 = arith.constant 3.200000e+01 : f32
    %120 = vector.broadcast %cst_45 : f32 to vector<16x1xf32>
    %121 = arith.divf %119, %120 : vector<16x1xf32>
    %122 = vector.broadcast %121 : vector<16x1xf32> to vector<16x32xf32>
    %123 = arith.subf %117, %122 : vector<16x32xf32>
    %124 = arith.mulf %123, %123 : vector<16x32xf32>
    %cst_46 = arith.constant dense<0.000000e+00> : vector<16xf32>
    %125 = vector.multi_reduction <add>, %124, %cst_46 [1] : vector<16x32xf32> to vector<16xf32>
    %126 = vector.shape_cast %125 : vector<16xf32> to vector<16x1xf32>
    %cst_47 = arith.constant 3.200000e+01 : f32
    %127 = vector.broadcast %cst_47 : f32 to vector<16x1xf32>
    %128 = arith.divf %126, %127 : vector<16x1xf32>
    %129 = vector.broadcast %121 : vector<16x1xf32> to vector<16x32xf32>
    %130 = arith.subf %117, %129 : vector<16x32xf32>
    %cst_48 = arith.constant 9.99999974E-6 : f32
    %131 = vector.broadcast %cst_48 : f32 to vector<16x1xf32>
    %132 = arith.addf %128, %131 : vector<16x1xf32>
    %133 = math.rsqrt %132 : vector<16x1xf32>
    %134 = vector.broadcast %133 : vector<16x1xf32> to vector<16x32xf32>
    %135 = arith.mulf %130, %134 : vector<16x32xf32>
    %136 = vector.broadcast %14 : vector<1x32xf32> to vector<16x32xf32>
    %137 = arith.mulf %135, %136 : vector<16x32xf32>
    %138 = vector.broadcast %15 : vector<1x32xf32> to vector<16x32xf32>
    %139 = arith.addf %137, %138 : vector<16x32xf32>
    %cst_49 = arith.constant dense<0.000000e+00> : vector<16x128xf32>
    %140 = tpu.matmul %139, %25, %cst_49 {dimension_numbers = #tpu.dot_dimension_numbers<[1], [0], [0], [1], [0, 0, 1, 1], [], []>} : vector<16x32xf32>, vector<32x128xf32>, vector<16x128xf32> -> vector<16x128xf32>
    %141 = vector.broadcast %16 : vector<1x128xf32> to vector<16x128xf32>
    %142 = arith.addf %140, %141 : vector<16x128xf32>
    %cst_50 = arith.constant 0.000000e+00 : f32
    %143 = vector.broadcast %cst_50 : f32 to vector<16x128xf32>
    %144 = arith.maximumf %142, %143 : vector<16x128xf32>
    %c0_51 = arith.constant 0 : index
    %c0_52 = arith.constant 0 : index
    %c0_53 = arith.constant 0 : index
    %145 = vector.load %arg4[%c0_51, %c0_52, %c0_53] : memref<2x128x32xf32, #tpu.memory_space<vmem>>, vector<1x128x32xf32>
    %146 = vector.shape_cast %145 : vector<1x128x32xf32> to vector<128x32xf32>
    %cst_54 = arith.constant dense<0.000000e+00> : vector<16x32xf32>
    %147 = tpu.matmul %144, %146, %cst_54 {dimension_numbers = #tpu.dot_dimension_numbers<[1], [0], [0], [1], [0, 0, 1, 1], [], []>} : vector<16x128xf32>, vector<128x32xf32>, vector<16x32xf32> -> vector<16x32xf32>
    %148 = vector.broadcast %17 : vector<1x32xf32> to vector<16x32xf32>
    %149 = arith.addf %147, %148 : vector<16x32xf32>
    %150 = arith.addf %139, %149 : vector<16x32xf32>
    %cst_55 = arith.constant dense<0.000000e+00> : vector<16xf32>
    %151 = vector.multi_reduction <add>, %150, %cst_55 [1] : vector<16x32xf32> to vector<16xf32>
    %152 = vector.shape_cast %151 : vector<16xf32> to vector<16x1xf32>
    %cst_56 = arith.constant 3.200000e+01 : f32
    %153 = vector.broadcast %cst_56 : f32 to vector<16x1xf32>
    %154 = arith.divf %152, %153 : vector<16x1xf32>
    %155 = vector.broadcast %154 : vector<16x1xf32> to vector<16x32xf32>
    %156 = arith.subf %150, %155 : vector<16x32xf32>
    %157 = arith.mulf %156, %156 : vector<16x32xf32>
    %cst_57 = arith.constant dense<0.000000e+00> : vector<16xf32>
    %158 = vector.multi_reduction <add>, %157, %cst_57 [1] : vector<16x32xf32> to vector<16xf32>
    %159 = vector.shape_cast %158 : vector<16xf32> to vector<16x1xf32>
    %cst_58 = arith.constant 3.200000e+01 : f32
    %160 = vector.broadcast %cst_58 : f32 to vector<16x1xf32>
    %161 = arith.divf %159, %160 : vector<16x1xf32>
    %162 = vector.broadcast %154 : vector<16x1xf32> to vector<16x32xf32>
    %163 = arith.subf %150, %162 : vector<16x32xf32>
    %cst_59 = arith.constant 9.99999974E-6 : f32
    %164 = vector.broadcast %cst_59 : f32 to vector<16x1xf32>
    %165 = arith.addf %161, %164 : vector<16x1xf32>
    %166 = math.rsqrt %165 : vector<16x1xf32>
    %167 = vector.broadcast %166 : vector<16x1xf32> to vector<16x32xf32>
    %168 = arith.mulf %163, %167 : vector<16x32xf32>
    %169 = vector.broadcast %18 : vector<1x32xf32> to vector<16x32xf32>
    %170 = arith.mulf %168, %169 : vector<16x32xf32>
    %171 = vector.broadcast %19 : vector<1x32xf32> to vector<16x32xf32>
    %172 = arith.addf %170, %171 : vector<16x32xf32>
    %c1_60 = arith.constant 1 : index
    %c0_61 = arith.constant 0 : index
    %c0_62 = arith.constant 0 : index
    %173 = vector.load %arg5[%c1_60, %c0_61, %c0_62] : memref<2x8x128xf32, #tpu.memory_space<vmem>>, vector<1x8x128xf32>
    %174 = vector.shape_cast %173 : vector<1x8x128xf32> to vector<8x128xf32>
    %175 = vector.extract_strided_slice %174 {offsets = [0, 0], sizes = [1, 128], strides = [1, 1]} : vector<8x128xf32> to vector<1x128xf32>
    %176 = vector.extract_strided_slice %174 {offsets = [1, 0], sizes = [1, 32], strides = [1, 1]} : vector<8x128xf32> to vector<1x32xf32>
    %177 = vector.extract_strided_slice %174 {offsets = [2, 0], sizes = [1, 32], strides = [1, 1]} : vector<8x128xf32> to vector<1x32xf32>
    %178 = vector.extract_strided_slice %174 {offsets = [3, 0], sizes = [1, 32], strides = [1, 1]} : vector<8x128xf32> to vector<1x32xf32>
    %179 = vector.extract_strided_slice %174 {offsets = [4, 0], sizes = [1, 128], strides = [1, 1]} : vector<8x128xf32> to vector<1x128xf32>
    %180 = vector.extract_strided_slice %174 {offsets = [5, 0], sizes = [1, 32], strides = [1, 1]} : vector<8x128xf32> to vector<1x32xf32>
    %181 = vector.extract_strided_slice %174 {offsets = [6, 0], sizes = [1, 32], strides = [1, 1]} : vector<8x128xf32> to vector<1x32xf32>
    %182 = vector.extract_strided_slice %174 {offsets = [7, 0], sizes = [1, 32], strides = [1, 1]} : vector<8x128xf32> to vector<1x32xf32>
    %c1_63 = arith.constant 1 : index
    %c0_64 = arith.constant 0 : index
    %c0_65 = arith.constant 0 : index
    %c0_66 = arith.constant 0 : index
    %183 = vector.load %arg3[%c1_63, %c0_64, %c0_65, %c0_66] : memref<2x3x32x128xf32, #tpu.memory_space<vmem>>, vector<1x1x32x128xf32>
    %184 = vector.shape_cast %183 : vector<1x1x32x128xf32> to vector<32x128xf32>
    %c1_67 = arith.constant 1 : index
    %c1_68 = arith.constant 1 : index
    %c0_69 = arith.constant 0 : index
    %c0_70 = arith.constant 0 : index
    %185 = vector.load %arg3[%c1_67, %c1_68, %c0_69, %c0_70] : memref<2x3x32x128xf32, #tpu.memory_space<vmem>>, vector<1x1x32x32xf32>
    %186 = vector.shape_cast %185 : vector<1x1x32x32xf32> to vector<32x32xf32>
    %c1_71 = arith.constant 1 : index
    %c2_72 = arith.constant 2 : index
    %c0_73 = arith.constant 0 : index
    %c0_74 = arith.constant 0 : index
    %187 = vector.load %arg3[%c1_71, %c2_72, %c0_73, %c0_74] : memref<2x3x32x128xf32, #tpu.memory_space<vmem>>, vector<1x1x32x128xf32>
    %188 = vector.shape_cast %187 : vector<1x1x32x128xf32> to vector<32x128xf32>
    %cst_75 = arith.constant dense<0.000000e+00> : vector<16x128xf32>
    %189 = tpu.matmul %172, %184, %cst_75 {dimension_numbers = #tpu.dot_dimension_numbers<[1], [0], [0], [1], [0, 0, 1, 1], [], []>} : vector<16x32xf32>, vector<32x128xf32>, vector<16x128xf32> -> vector<16x128xf32>
    %190 = vector.broadcast %175 : vector<1x128xf32> to vector<16x128xf32>
    %191 = arith.addf %189, %190 : vector<16x128xf32>
    %192 = vector.shape_cast %191 : vector<16x128xf32> to vector<2x8x128xf32>
    %cst_76 = arith.constant 0.000000e+00 : f32
    %193 = vector.broadcast %cst_76 : f32 to vector<16x32xf32>
    %194 = vector.extract_strided_slice %192 {offsets = [0, 0, 0], sizes = [2, 8, 8], strides = [1, 1, 1]} : vector<2x8x128xf32> to vector<2x8x8xf32>
    %195 = vector.extract_strided_slice %192 {offsets = [0, 0, 8], sizes = [2, 8, 8], strides = [1, 1, 1]} : vector<2x8x128xf32> to vector<2x8x8xf32>
    %196 = vector.extract_strided_slice %192 {offsets = [0, 0, 16], sizes = [2, 8, 8], strides = [1, 1, 1]} : vector<2x8x128xf32> to vector<2x8x8xf32>
    "tpu.trace_start"() <{level = 10 : i32, message = "bqd,bkd->bqk"}> : () -> ()
    %cst_77 = arith.constant dense<0.000000e+00> : vector<2x8x8xf32>
    %197 = tpu.matmul %194, %195, %cst_77 {dimension_numbers = #tpu.dot_dimension_numbers<[2], [2], [1], [1], [0, 0, 0, 1, 1, 1], [0], [0]>} : vector<2x8x8xf32>, vector<2x8x8xf32>, vector<2x8x8xf32> -> vector<2x8x8xf32>
    "tpu.trace_stop"() : () -> ()
    %cst_78 = arith.constant 0.353553385 : f32
    %198 = vector.broadcast %cst_78 : f32 to vector<2x8x8xf32>
    %199 = arith.mulf %197, %198 : vector<2x8x8xf32>
    %cst_79 = arith.constant dense<0xFF800000> : vector<2x8xf32>
    %200 = vector.multi_reduction <maximumf>, %199, %cst_79 [2] : vector<2x8x8xf32> to vector<2x8xf32>
    %201 = vector.shape_cast %200 : vector<2x8xf32> to vector<2x8x1xf32>
    %202 = vector.broadcast %201 : vector<2x8x1xf32> to vector<2x8x8xf32>
    %203 = arith.subf %199, %202 : vector<2x8x8xf32>
    %204 = math.exp %203 : vector<2x8x8xf32>
    %cst_80 = arith.constant dense<0.000000e+00> : vector<2x8xf32>
    %205 = vector.multi_reduction <add>, %204, %cst_80 [2] : vector<2x8x8xf32> to vector<2x8xf32>
    %206 = vector.shape_cast %205 : vector<2x8xf32> to vector<2x8x1xf32>
    %207 = tpu.reciprocal %206 {approx = true} : vector<2x8x1xf32> -> vector<2x8x1xf32>
    %208 = vector.broadcast %207 : vector<2x8x1xf32> to vector<2x8x8xf32>
    %209 = arith.mulf %204, %208 : vector<2x8x8xf32>
    "tpu.trace_start"() <{level = 10 : i32, message = "bqk,bkd->bqd"}> : () -> ()
    %cst_81 = arith.constant dense<0.000000e+00> : vector<2x8x8xf32>
    %210 = tpu.matmul %209, %196, %cst_81 {dimension_numbers = #tpu.dot_dimension_numbers<[2], [1], [1], [2], [0, 0, 0, 1, 1, 2], [0], [0]>} : vector<2x8x8xf32>, vector<2x8x8xf32>, vector<2x8x8xf32> -> vector<2x8x8xf32>
    "tpu.trace_stop"() : () -> ()
    %211 = vector.shape_cast %210 : vector<2x8x8xf32> to vector<16x8xf32>
    %212 = vector.extract_strided_slice %186 {offsets = [0, 0], sizes = [8, 32], strides = [1, 1]} : vector<32x32xf32> to vector<8x32xf32>
    %cst_82 = arith.constant dense<0.000000e+00> : vector<16x32xf32>
    %213 = tpu.matmul %211, %212, %cst_82 {dimension_numbers = #tpu.dot_dimension_numbers<[1], [0], [0], [1], [0, 0, 1, 1], [], []>} : vector<16x8xf32>, vector<8x32xf32>, vector<16x32xf32> -> vector<16x32xf32>
    %214 = arith.addf %193, %213 : vector<16x32xf32>
    %215 = vector.extract_strided_slice %192 {offsets = [0, 0, 24], sizes = [2, 8, 8], strides = [1, 1, 1]} : vector<2x8x128xf32> to vector<2x8x8xf32>
    %216 = vector.extract_strided_slice %192 {offsets = [0, 0, 32], sizes = [2, 8, 8], strides = [1, 1, 1]} : vector<2x8x128xf32> to vector<2x8x8xf32>
    %217 = vector.extract_strided_slice %192 {offsets = [0, 0, 40], sizes = [2, 8, 8], strides = [1, 1, 1]} : vector<2x8x128xf32> to vector<2x8x8xf32>
    "tpu.trace_start"() <{level = 10 : i32, message = "bqd,bkd->bqk"}> : () -> ()
    %cst_83 = arith.constant dense<0.000000e+00> : vector<2x8x8xf32>
    %218 = tpu.matmul %215, %216, %cst_83 {dimension_numbers = #tpu.dot_dimension_numbers<[2], [2], [1], [1], [0, 0, 0, 1, 1, 1], [0], [0]>} : vector<2x8x8xf32>, vector<2x8x8xf32>, vector<2x8x8xf32> -> vector<2x8x8xf32>
    "tpu.trace_stop"() : () -> ()
    %cst_84 = arith.constant 0.353553385 : f32
    %219 = vector.broadcast %cst_84 : f32 to vector<2x8x8xf32>
    %220 = arith.mulf %218, %219 : vector<2x8x8xf32>
    %cst_85 = arith.constant dense<0xFF800000> : vector<2x8xf32>
    %221 = vector.multi_reduction <maximumf>, %220, %cst_85 [2] : vector<2x8x8xf32> to vector<2x8xf32>
    %222 = vector.shape_cast %221 : vector<2x8xf32> to vector<2x8x1xf32>
    %223 = vector.broadcast %222 : vector<2x8x1xf32> to vector<2x8x8xf32>
    %224 = arith.subf %220, %223 : vector<2x8x8xf32>
    %225 = math.exp %224 : vector<2x8x8xf32>
    %cst_86 = arith.constant dense<0.000000e+00> : vector<2x8xf32>
    %226 = vector.multi_reduction <add>, %225, %cst_86 [2] : vector<2x8x8xf32> to vector<2x8xf32>
    %227 = vector.shape_cast %226 : vector<2x8xf32> to vector<2x8x1xf32>
    %228 = tpu.reciprocal %227 {approx = true} : vector<2x8x1xf32> -> vector<2x8x1xf32>
    %229 = vector.broadcast %228 : vector<2x8x1xf32> to vector<2x8x8xf32>
    %230 = arith.mulf %225, %229 : vector<2x8x8xf32>
    "tpu.trace_start"() <{level = 10 : i32, message = "bqk,bkd->bqd"}> : () -> ()
    %cst_87 = arith.constant dense<0.000000e+00> : vector<2x8x8xf32>
    %231 = tpu.matmul %230, %217, %cst_87 {dimension_numbers = #tpu.dot_dimension_numbers<[2], [1], [1], [2], [0, 0, 0, 1, 1, 2], [0], [0]>} : vector<2x8x8xf32>, vector<2x8x8xf32>, vector<2x8x8xf32> -> vector<2x8x8xf32>
    "tpu.trace_stop"() : () -> ()
    %232 = vector.shape_cast %231 : vector<2x8x8xf32> to vector<16x8xf32>
    %233 = vector.extract_strided_slice %186 {offsets = [8, 0], sizes = [8, 32], strides = [1, 1]} : vector<32x32xf32> to vector<8x32xf32>
    %cst_88 = arith.constant dense<0.000000e+00> : vector<16x32xf32>
    %234 = tpu.matmul %232, %233, %cst_88 {dimension_numbers = #tpu.dot_dimension_numbers<[1], [0], [0], [1], [0, 0, 1, 1], [], []>} : vector<16x8xf32>, vector<8x32xf32>, vector<16x32xf32> -> vector<16x32xf32>
    %235 = arith.addf %214, %234 : vector<16x32xf32>
    %236 = vector.extract_strided_slice %192 {offsets = [0, 0, 48], sizes = [2, 8, 8], strides = [1, 1, 1]} : vector<2x8x128xf32> to vector<2x8x8xf32>
    %237 = vector.extract_strided_slice %192 {offsets = [0, 0, 56], sizes = [2, 8, 8], strides = [1, 1, 1]} : vector<2x8x128xf32> to vector<2x8x8xf32>
    %238 = vector.extract_strided_slice %192 {offsets = [0, 0, 64], sizes = [2, 8, 8], strides = [1, 1, 1]} : vector<2x8x128xf32> to vector<2x8x8xf32>
    "tpu.trace_start"() <{level = 10 : i32, message = "bqd,bkd->bqk"}> : () -> ()
    %cst_89 = arith.constant dense<0.000000e+00> : vector<2x8x8xf32>
    %239 = tpu.matmul %236, %237, %cst_89 {dimension_numbers = #tpu.dot_dimension_numbers<[2], [2], [1], [1], [0, 0, 0, 1, 1, 1], [0], [0]>} : vector<2x8x8xf32>, vector<2x8x8xf32>, vector<2x8x8xf32> -> vector<2x8x8xf32>
    "tpu.trace_stop"() : () -> ()
    %cst_90 = arith.constant 0.353553385 : f32
    %240 = vector.broadcast %cst_90 : f32 to vector<2x8x8xf32>
    %241 = arith.mulf %239, %240 : vector<2x8x8xf32>
    %cst_91 = arith.constant dense<0xFF800000> : vector<2x8xf32>
    %242 = vector.multi_reduction <maximumf>, %241, %cst_91 [2] : vector<2x8x8xf32> to vector<2x8xf32>
    %243 = vector.shape_cast %242 : vector<2x8xf32> to vector<2x8x1xf32>
    %244 = vector.broadcast %243 : vector<2x8x1xf32> to vector<2x8x8xf32>
    %245 = arith.subf %241, %244 : vector<2x8x8xf32>
    %246 = math.exp %245 : vector<2x8x8xf32>
    %cst_92 = arith.constant dense<0.000000e+00> : vector<2x8xf32>
    %247 = vector.multi_reduction <add>, %246, %cst_92 [2] : vector<2x8x8xf32> to vector<2x8xf32>
    %248 = vector.shape_cast %247 : vector<2x8xf32> to vector<2x8x1xf32>
    %249 = tpu.reciprocal %248 {approx = true} : vector<2x8x1xf32> -> vector<2x8x1xf32>
    %250 = vector.broadcast %249 : vector<2x8x1xf32> to vector<2x8x8xf32>
    %251 = arith.mulf %246, %250 : vector<2x8x8xf32>
    "tpu.trace_start"() <{level = 10 : i32, message = "bqk,bkd->bqd"}> : () -> ()
    %cst_93 = arith.constant dense<0.000000e+00> : vector<2x8x8xf32>
    %252 = tpu.matmul %251, %238, %cst_93 {dimension_numbers = #tpu.dot_dimension_numbers<[2], [1], [1], [2], [0, 0, 0, 1, 1, 2], [0], [0]>} : vector<2x8x8xf32>, vector<2x8x8xf32>, vector<2x8x8xf32> -> vector<2x8x8xf32>
    "tpu.trace_stop"() : () -> ()
    %253 = vector.shape_cast %252 : vector<2x8x8xf32> to vector<16x8xf32>
    %254 = vector.extract_strided_slice %186 {offsets = [16, 0], sizes = [8, 32], strides = [1, 1]} : vector<32x32xf32> to vector<8x32xf32>
    %cst_94 = arith.constant dense<0.000000e+00> : vector<16x32xf32>
    %255 = tpu.matmul %253, %254, %cst_94 {dimension_numbers = #tpu.dot_dimension_numbers<[1], [0], [0], [1], [0, 0, 1, 1], [], []>} : vector<16x8xf32>, vector<8x32xf32>, vector<16x32xf32> -> vector<16x32xf32>
    %256 = arith.addf %235, %255 : vector<16x32xf32>
    %257 = vector.extract_strided_slice %192 {offsets = [0, 0, 72], sizes = [2, 8, 8], strides = [1, 1, 1]} : vector<2x8x128xf32> to vector<2x8x8xf32>
    %258 = vector.extract_strided_slice %192 {offsets = [0, 0, 80], sizes = [2, 8, 8], strides = [1, 1, 1]} : vector<2x8x128xf32> to vector<2x8x8xf32>
    %259 = vector.extract_strided_slice %192 {offsets = [0, 0, 88], sizes = [2, 8, 8], strides = [1, 1, 1]} : vector<2x8x128xf32> to vector<2x8x8xf32>
    "tpu.trace_start"() <{level = 10 : i32, message = "bqd,bkd->bqk"}> : () -> ()
    %cst_95 = arith.constant dense<0.000000e+00> : vector<2x8x8xf32>
    %260 = tpu.matmul %257, %258, %cst_95 {dimension_numbers = #tpu.dot_dimension_numbers<[2], [2], [1], [1], [0, 0, 0, 1, 1, 1], [0], [0]>} : vector<2x8x8xf32>, vector<2x8x8xf32>, vector<2x8x8xf32> -> vector<2x8x8xf32>
    "tpu.trace_stop"() : () -> ()
    %cst_96 = arith.constant 0.353553385 : f32
    %261 = vector.broadcast %cst_96 : f32 to vector<2x8x8xf32>
    %262 = arith.mulf %260, %261 : vector<2x8x8xf32>
    %cst_97 = arith.constant dense<0xFF800000> : vector<2x8xf32>
    %263 = vector.multi_reduction <maximumf>, %262, %cst_97 [2] : vector<2x8x8xf32> to vector<2x8xf32>
    %264 = vector.shape_cast %263 : vector<2x8xf32> to vector<2x8x1xf32>
    %265 = vector.broadcast %264 : vector<2x8x1xf32> to vector<2x8x8xf32>
    %266 = arith.subf %262, %265 : vector<2x8x8xf32>
    %267 = math.exp %266 : vector<2x8x8xf32>
    %cst_98 = arith.constant dense<0.000000e+00> : vector<2x8xf32>
    %268 = vector.multi_reduction <add>, %267, %cst_98 [2] : vector<2x8x8xf32> to vector<2x8xf32>
    %269 = vector.shape_cast %268 : vector<2x8xf32> to vector<2x8x1xf32>
    %270 = tpu.reciprocal %269 {approx = true} : vector<2x8x1xf32> -> vector<2x8x1xf32>
    %271 = vector.broadcast %270 : vector<2x8x1xf32> to vector<2x8x8xf32>
    %272 = arith.mulf %267, %271 : vector<2x8x8xf32>
    "tpu.trace_start"() <{level = 10 : i32, message = "bqk,bkd->bqd"}> : () -> ()
    %cst_99 = arith.constant dense<0.000000e+00> : vector<2x8x8xf32>
    %273 = tpu.matmul %272, %259, %cst_99 {dimension_numbers = #tpu.dot_dimension_numbers<[2], [1], [1], [2], [0, 0, 0, 1, 1, 2], [0], [0]>} : vector<2x8x8xf32>, vector<2x8x8xf32>, vector<2x8x8xf32> -> vector<2x8x8xf32>
    "tpu.trace_stop"() : () -> ()
    %274 = vector.shape_cast %273 : vector<2x8x8xf32> to vector<16x8xf32>
    %275 = vector.extract_strided_slice %186 {offsets = [24, 0], sizes = [8, 32], strides = [1, 1]} : vector<32x32xf32> to vector<8x32xf32>
    %cst_100 = arith.constant dense<0.000000e+00> : vector<16x32xf32>
    %276 = tpu.matmul %274, %275, %cst_100 {dimension_numbers = #tpu.dot_dimension_numbers<[1], [0], [0], [1], [0, 0, 1, 1], [], []>} : vector<16x8xf32>, vector<8x32xf32>, vector<16x32xf32> -> vector<16x32xf32>
    %277 = arith.addf %256, %276 : vector<16x32xf32>
    %278 = arith.addf %172, %277 : vector<16x32xf32>
    %279 = vector.broadcast %176 : vector<1x32xf32> to vector<16x32xf32>
    %280 = arith.addf %278, %279 : vector<16x32xf32>
    %cst_101 = arith.constant dense<0.000000e+00> : vector<16xf32>
    %281 = vector.multi_reduction <add>, %280, %cst_101 [1] : vector<16x32xf32> to vector<16xf32>
    %282 = vector.shape_cast %281 : vector<16xf32> to vector<16x1xf32>
    %cst_102 = arith.constant 3.200000e+01 : f32
    %283 = vector.broadcast %cst_102 : f32 to vector<16x1xf32>
    %284 = arith.divf %282, %283 : vector<16x1xf32>
    %285 = vector.broadcast %284 : vector<16x1xf32> to vector<16x32xf32>
    %286 = arith.subf %280, %285 : vector<16x32xf32>
    %287 = arith.mulf %286, %286 : vector<16x32xf32>
    %cst_103 = arith.constant dense<0.000000e+00> : vector<16xf32>
    %288 = vector.multi_reduction <add>, %287, %cst_103 [1] : vector<16x32xf32> to vector<16xf32>
    %289 = vector.shape_cast %288 : vector<16xf32> to vector<16x1xf32>
    %cst_104 = arith.constant 3.200000e+01 : f32
    %290 = vector.broadcast %cst_104 : f32 to vector<16x1xf32>
    %291 = arith.divf %289, %290 : vector<16x1xf32>
    %292 = vector.broadcast %284 : vector<16x1xf32> to vector<16x32xf32>
    %293 = arith.subf %280, %292 : vector<16x32xf32>
    %cst_105 = arith.constant 9.99999974E-6 : f32
    %294 = vector.broadcast %cst_105 : f32 to vector<16x1xf32>
    %295 = arith.addf %291, %294 : vector<16x1xf32>
    %296 = math.rsqrt %295 : vector<16x1xf32>
    %297 = vector.broadcast %296 : vector<16x1xf32> to vector<16x32xf32>
    %298 = arith.mulf %293, %297 : vector<16x32xf32>
    %299 = vector.broadcast %177 : vector<1x32xf32> to vector<16x32xf32>
    %300 = arith.mulf %298, %299 : vector<16x32xf32>
    %301 = vector.broadcast %178 : vector<1x32xf32> to vector<16x32xf32>
    %302 = arith.addf %300, %301 : vector<16x32xf32>
    %cst_106 = arith.constant dense<0.000000e+00> : vector<16x128xf32>
    %303 = tpu.matmul %302, %188, %cst_106 {dimension_numbers = #tpu.dot_dimension_numbers<[1], [0], [0], [1], [0, 0, 1, 1], [], []>} : vector<16x32xf32>, vector<32x128xf32>, vector<16x128xf32> -> vector<16x128xf32>
    %304 = vector.broadcast %179 : vector<1x128xf32> to vector<16x128xf32>
    %305 = arith.addf %303, %304 : vector<16x128xf32>
    %cst_107 = arith.constant 0.000000e+00 : f32
    %306 = vector.broadcast %cst_107 : f32 to vector<16x128xf32>
    %307 = arith.maximumf %305, %306 : vector<16x128xf32>
    %c1_108 = arith.constant 1 : index
    %c0_109 = arith.constant 0 : index
    %c0_110 = arith.constant 0 : index
    %308 = vector.load %arg4[%c1_108, %c0_109, %c0_110] : memref<2x128x32xf32, #tpu.memory_space<vmem>>, vector<1x128x32xf32>
    %309 = vector.shape_cast %308 : vector<1x128x32xf32> to vector<128x32xf32>
    %cst_111 = arith.constant dense<0.000000e+00> : vector<16x32xf32>
    %310 = tpu.matmul %307, %309, %cst_111 {dimension_numbers = #tpu.dot_dimension_numbers<[1], [0], [0], [1], [0, 0, 1, 1], [], []>} : vector<16x128xf32>, vector<128x32xf32>, vector<16x32xf32> -> vector<16x32xf32>
    %311 = vector.broadcast %180 : vector<1x32xf32> to vector<16x32xf32>
    %312 = arith.addf %310, %311 : vector<16x32xf32>
    %313 = arith.addf %302, %312 : vector<16x32xf32>
    %cst_112 = arith.constant dense<0.000000e+00> : vector<16xf32>
    %314 = vector.multi_reduction <add>, %313, %cst_112 [1] : vector<16x32xf32> to vector<16xf32>
    %315 = vector.shape_cast %314 : vector<16xf32> to vector<16x1xf32>
    %cst_113 = arith.constant 3.200000e+01 : f32
    %316 = vector.broadcast %cst_113 : f32 to vector<16x1xf32>
    %317 = arith.divf %315, %316 : vector<16x1xf32>
    %318 = vector.broadcast %317 : vector<16x1xf32> to vector<16x32xf32>
    %319 = arith.subf %313, %318 : vector<16x32xf32>
    %320 = arith.mulf %319, %319 : vector<16x32xf32>
    %cst_114 = arith.constant dense<0.000000e+00> : vector<16xf32>
    %321 = vector.multi_reduction <add>, %320, %cst_114 [1] : vector<16x32xf32> to vector<16xf32>
    %322 = vector.shape_cast %321 : vector<16xf32> to vector<16x1xf32>
    %cst_115 = arith.constant 3.200000e+01 : f32
    %323 = vector.broadcast %cst_115 : f32 to vector<16x1xf32>
    %324 = arith.divf %322, %323 : vector<16x1xf32>
    %325 = vector.broadcast %317 : vector<16x1xf32> to vector<16x32xf32>
    %326 = arith.subf %313, %325 : vector<16x32xf32>
    %cst_116 = arith.constant 9.99999974E-6 : f32
    %327 = vector.broadcast %cst_116 : f32 to vector<16x1xf32>
    %328 = arith.addf %324, %327 : vector<16x1xf32>
    %329 = math.rsqrt %328 : vector<16x1xf32>
    %330 = vector.broadcast %329 : vector<16x1xf32> to vector<16x32xf32>
    %331 = arith.mulf %326, %330 : vector<16x32xf32>
    %332 = vector.broadcast %181 : vector<1x32xf32> to vector<16x32xf32>
    %333 = arith.mulf %331, %332 : vector<16x32xf32>
    %334 = vector.broadcast %182 : vector<1x32xf32> to vector<16x32xf32>
    %335 = arith.addf %333, %334 : vector<16x32xf32>
    %c0_117 = arith.constant 0 : index
    %c0_118 = arith.constant 0 : index
    %336 = vector.load %arg6[%c0_117, %c0_118] : memref<16x32xf32, #tpu.memory_space<vmem>>, vector<16x32xf32>
    tpu.vector_store %arg6[%c0_117, %c0_118], %335 {strides = array<i32>} : memref<16x32xf32, #tpu.memory_space<vmem>>, vector<16x32xf32>,
    return
  }
}

</mosaic_0001>

<bundles_post_ra>
// kernel: tpu_custom_call.1
= control target key start
LH: loop header
LB: loop body
LE: loop exit
PB: predicated region body
PF: predicated region fallthrough
CT: control target
= control target key end

     0   :  { %v5092_v2 = vmov 0   ;;  %s5825_s0 = inlined_call_operand.vmem [shape: s32[16,1], index: 0, kind: input, shape index: {}]   ;;  %s5826_s1 = inlined_call_operand.vmem [shape: f32[128,32], index: 1, kind: input, shape index: {}]   ;;  %s5827_s2 = inlined_call_operand.vmem [shape: f32[16,32], index: 2, kind: input, shape index: {}]   ;;  %s5828_s3 = inlined_call_operand.vmem [shape: f32[2,3,32,128], index: 3, kind: input, shape index: {}]   ;;  %s5829_s4 = inlined_call_operand.vmem [shape: f32[2,128,32], index: 4, kind: input, shape index: {}]   ;;  %s5830_s5 = inlined_call_operand.vmem [shape: f32[2,8,128], index: 5, kind: input, shape index: {}]   ;;  %s5831_s6 = inlined_call_operand.hbm [shape: f32[16,32], index: 6, kind: output, shape index: {}]  }
   0x1   :  { %v24_v0 = vld [vmem:[%s5825_s0] sm:$0xff]  ;;  %4987 = vset.pattern.permute.xlu0 %v5092_v2  ;;  %v41_v3 = vld [vmem:[%s5826_s1 + $0x8] sm:$0xff]  ;;  %v42_v4 = vld [vmem:[%s5826_s1 + $0x10] sm:$0xff] }
   0x2   :  { %v40_v1 = vld [vmem:[%s5826_s1] sm:$0xff]  ;;  %v43_v5 = vld [vmem:[%s5826_s1 + $0x18] sm:$0xff]  ;;  %29 = vperm.xlu0 %4987, %v24_v0   ;;  %v25_v8 = vld [vmem:[%s5825_s0 + $0x8] sm:$0xff] }
   0x3   :  { %v4829_v6 = vpack.c.bf16 %v41_v3, %v40_v1  ;;  %v4833_v7 = vpack.c.bf16 %v43_v5, %v42_v4  ;;  %v44_v9 = vld [vmem:[%s5826_s1 + $0x20] sm:$0xff]  ;;  %v45_v10 = vld [vmem:[%s5826_s1 + $0x28] sm:$0xff]  ;;  %v46_v12 = vld [vmem:[%s5826_s1 + $0x30] sm:$0xff] }
   0x4   :  { %v4837_v11 = vpack.c.bf16 %v45_v10, %v44_v9 }
   0x5   :  { %4830 = vmatprep.subr.bf16.mxu0 %v4829_v6 }
   0x6   :  { %4832 = vmatpush3.bf16.msra.mxu0 %v4829_v6  ;;  %32 = vperm.xlu0 %4987, %v25_v8  }
   0x7   :  { %4834 = vmatprep.subr.bf16.mxu0 %v4833_v7 }
   0x8   :  { %11 = vsyncpa [#allocation3], 0  ;;  %v47_v13 = vld [vmem:[%s5826_s1 + $0x38] sm:$0xff]  ;;  %v134_v14 = vld [vmem:[%s5828_s3] sm:$0xff]  ;;  %v26_v30 = vlaneseq  ;;  %v5093_v33 = vmov 1.0   ;;  %vm152_vm2 = vcmask 261120  }
   0x9   :  { %v135_v15 = vld [vmem:[%s5828_s3 + $0x8] sm:$0xff]  ;;  %v4841_v17 = vpack.c.bf16 %v47_v13, %v46_v12  ;;  %v48_v18 = vld [vmem:[%s5826_s1 + $0x40] sm:$0xff]  ;;  %v50_v21 = vld [vmem:[%s5826_s1 + $0x50] sm:$0xff]  ;;  %v5094_v44 = vmov 0.0   ;;  %vm5095_vm3 = vmmov 0   ;;  %s5096_s19 = smov 120  }
   0xa   :  { %v4861_v16 = vpack.c.bf16 %v135_v15, %v134_v14  ;;  %4836 = vmatpush3.bf16.msra.mxu0 %v4833_v7  ;;  %v49_v19 = vld [vmem:[%s5826_s1 + $0x48] sm:$0xff]  ;;  %v51_v22 = vld [vmem:[%s5826_s1 + $0x58] sm:$0xff]  ;;  %v52_v24 = vld [vmem:[%s5826_s1 + $0x60] sm:$0xff]  ;;  %v27_v31 = vand.u32 127, %v26_v30  ;;  %v5226_v45 = vshrl.u32 %v26_v30, 7  ;;  %vm237_vm4 = vcmask 64512  }
   0xb   :  { %4838 = vmatprep.subr.bf16.mxu0 %v4837_v11  ;;  %v4845_v20 = vpack.c.bf16 %v49_v19, %v48_v18  ;;  %v4849_v23 = vpack.c.bf16 %v51_v22, %v50_v21  ;;  %v53_v25 = vld [vmem:[%s5826_s1 + $0x68] sm:$0xff]  ;;  %v54_v27 = vld [vmem:[%s5826_s1 + $0x70] sm:$0xff]  ;;  %v55_v28 = vld [vmem:[%s5826_s1 + $0x78] sm:$0xff]  ;;  %s5097_s20 = smov 112   ;;  %s5098_s21 = smov 96  }
   0xc   :  { %4862 = vmatprep.subr.bf16.mxu1 %v4861_v16  ;;  %v4853_v26 = vpack.c.bf16 %v53_v25, %v52_v24  ;;  %v4857_v29 = vpack.c.bf16 %v55_v28, %v54_v27  ;;  %v136_v35 = vld [vmem:[%s5828_s3 + $0x10] sm:$0xff]  ;;  %v137_v36 = vld [vmem:[%s5828_s3 + $0x18] sm:$0xff]  ;;  %v56_v38 = vld [vmem:[%s5827_s2] sm:$0xff]  ;;  %v150_v46 = vsub.s32 0, %v5226_v45  ;;  %s5099_s22 = smov 104   ;;  %s5100_s23 = smov 88  }
   0xd   :  { %4864 = vmatpush3.bf16.msra.mxu1 %v4861_v16  ;;  %v4865_v37 = vpack.c.bf16 %v137_v36, %v136_v35  ;;  %v57_v39 = vld [vmem:[%s5827_s2 + $0x8] sm:$0xff]  ;;  %v5234_v47 = vld [vmem:[%s5830_s5] sm:$0xff]  ;;  %s5101_s24 = smov 72   ;;  %s5102_s25 = smov 80  }
   0xe   :  { %4840 = vmatpush3.bf16.msra.mxu0 %v4837_v11  ;;  %v151_v48 = vrot.slane %v5234_v47, %v150_v46  ;;  %s5103_s30 = smov 64   ;;  %s5104_s7 = smov 48  }
   0xf   :  { %4842 = vmatprep.subr.bf16.mxu0 %v4841_v17  ;;  %4866 = vmatprep.subr.bf16.mxu1 %v4865_v37  ;;  %s5105_s8 = smov 56   ;;  %s5106_s11 = smov 40  }
  0x11   :  { %4868 = vmatpush3.bf16.msra.mxu1 %v4865_v37 }
  0x12   :  { %4844 = vmatpush3.bf16.msra.mxu0 %v4841_v17  ;;  %4526 = vmatprep.subr.mxu1 %v5094_v44 }
  0x13   :  { %4846 = vmatprep.subr.bf16.mxu0 %v4845_v20 }
  0x16   :  { %4848 = vmatpush3.bf16.msra.mxu0 %v4845_v20 }
  0x17   :  { %4850 = vmatprep.subr.bf16.mxu0 %v4849_v23 }
  0x1a   :  { %4852 = vmatpush3.bf16.msra.mxu0 %v4849_v23 }
  0x1b   :  { %4854 = vmatprep.subr.bf16.mxu0 %v4853_v26 }
  0x1e   :  { %4856 = vmatpush3.bf16.msra.mxu0 %v4853_v26 }
  0x1f   :  { %4858 = vmatprep.subr.bf16.mxu0 %v4857_v29 }
  0x22   :  { %4860 = vmatpush3.bf16.msra.mxu0 %v4857_v29 }
  0x81   :  { %v30_v32 = vpop.permute.xlu0 %29 }
  0x82   :  { %vm34_vm0 = vcmp.eq.s32.totalorder %v27_v31, %v30_v32 }
  0x83   :  { %4512 = vmatprep.mubr.msk.f32.mxu0 %vm34_vm0, %v5093_v33 }
  0x85   :  { %v33_v34 = vpop.permute.xlu0 %32 }
  0x86   :  { %vm35_vm1 = vcmp.eq.s32.totalorder %v27_v31, %v33_v34 }
  0x87   :  { %4513 = vmatmul.mubr.msk.f32.vlgmr.msra.gmra.mrb[0].mxu0 %vm35_vm1, %v5093_v33 }
 0x15a   :  { %v4514_v40 = vpop.f32.mrb[0].mxu0 }
 0x15b   :  { %v124_v41 = vpop.f32.mrb[1].mxu0  ;;  %v5219_v43 = vadd.f32 %v4514_v40, %v57_v39 }
 0x15c   :  { %v5217_v42 = vadd.f32 %v124_v41, %v56_v38 }
 0x15e   :  { %4523 = vmatprep.mubr.msk.f32.mxu1 %vm152_vm2, %v5217_v42 }
 0x15f   :  { %4524 = vmatmul.mubr.msk.f32.vlgmr.msra.gmra.mrb[0].mxu1 %vm152_vm2, %v5219_v43 }
 0x160   :  { %4528 = vmatprep.mubr.msk.f32.mxu1 %vm5095_vm3, %v5094_v44 }
 0x232   :  { %v4525_v49 = vpop.f32.mrb[0].mxu1 }
 0x233   :  { %v225_v50 = vpop.f32.mrb[1].mxu1  ;;  %v5243_v52 = vadd.f32 %v4525_v49, %v151_v48 }
 0x234   :  { %v5239_v51 = vadd.f32 %v225_v50, %v151_v48 }
 0x236   :  { %235 = vrot.lane.b32.xlu1 %v5239_v51, %s5096_s19 }
 0x23a   :  { %313 = vrot.lane.b32.xlu1 %v5243_v52, %s5096_s19 }
 0x2a8   :  { %v236_v53 = vpop.permute.xlu1 %235 }
 0x2a9   :  { %4527 = vmatpush3.xpose.msk.msra.mxu1 %vm237_vm4, %v236_v53 }
 0x2aa   :  { %4531 = vmatprep.subr.mxu1 %v5094_v44 }
 0x2ac   :  { %4529 = vmatmul.mubr.msk.f32.vlgmr.msra.gmra.mrb[2].mxu1 %vm237_vm4, %v5239_v51  ;;  %v314_v54 = vpop.permute.xlu1 %313 }
 0x2ad   :  { %4532 = vmatpush3.xpose.msk.msra.mxu1 %vm237_vm4, %v314_v54  ;;  %4533 = vmatprep.mubr.msk.f32.mxu1 %vm5095_vm3, %v5094_v44 }
 0x2ae   :  { %4536 = vmatprep.subr.mxu1 %v5094_v44 }
 0x2b0   :  { %4534 = vmatmul.mubr.msk.f32.vlgmr.msra.gmra.mrb[4].mxu1 %vm237_vm4, %v5243_v52 }
 0x2b1   :  { %4538 = vmatprep.mubr.msk.f32.mxu1 %vm5095_vm3, %v5094_v44 }
 0x37f   :  { %v308_v55 = vpop.f32.mrb[2].mxu1 }
 0x380   :  { %v389_v56 = vmul.f32 0.35355338, %v308_v55  ;;  %v4530_v57 = vpop.f32.mrb[3].mxu1 }
 0x382   :  { %v391_v58 = vsel %vm237_vm4, %v389_v56, -inf }
 0x383   :  { %392 = vmax.xlane.f32.xlu0 %v391_v58  ;;  %v385_v59 = vpop.f32.mrb[4].mxu1 }
 0x384   :  { %v390_v60 = vmul.f32 0.35355338, %v385_v59  ;;  %v4535_v61 = vpop.f32.mrb[5].mxu1  ;;  %v4206_v59 = vld [vmem:[%s5828_s3 + $0x28] sm:$0xff] }
 0x386   :  { %v394_v62 = vsel %vm237_vm4, %v390_v60, -inf }
 0x387   :  { %395 = vmax.xlane.f32.xlu1 %v394_v62 }
 0x398   :  { %413 = vrot.lane.b32.xlu1 %v5239_v51, %s5097_s20 }
 0x39c   :  { %567 = vrot.lane.b32.xlu1 %v5239_v51, %s5098_s21 }
 0x3a0   :  { %565 = vrot.lane.b32.xlu1 %v5239_v51, %s5099_s22 }
 0x3a4   :  { %643 = vrot.lane.b32.xlu1 %v5243_v52, %s5099_s22 }
 0x410   :  { %v393_v63 = vpop.xlane.xlu0 %392 }
 0x411   :  { %v397_v0 = vsub.f32 %v389_v56, %v393_v63 }
 0x413   :  { %v399_v1 = vmul.f32 1.442695, %v397_v0 }
 0x414   :  { %v396_v2 = vpop.xlane.xlu1 %395 }
 0x415   :  { %4988 = vpow2.f32 %v399_v1  ;;  %v398_v3 = vsub.f32 %v390_v60, %v396_v2  ;;  %v4205_v60 = vld [vmem:[%s5828_s3 + $0x20] sm:$0xff] }
 0x417   :  { %v401_v4 = vmul.f32 1.442695, %v398_v3 }
 0x418   :  { %v414_v5 = vpop.permute.xlu1 %413 }
 0x419   :  { %4990 = vpow2.f32 %v401_v4  ;;  %4537 = vmatpush3.msra.mxu1 %v414_v5 }
 0x41a   :  { %4541 = vmatprep.subr.mxu1 %v5094_v44 }
 0x41c   :  { %v568_v16 = vpop.permute.xlu1 %567 }
 0x41f   :  { %v4989_v6 = vpop.eup %4988 }
 0x420   :  { %v403_v7 = vsel %vm237_vm4, %v4989_v6, 0.0  ;;  %v566_v18 = vpop.permute.xlu1 %565 }
 0x421   :  { %404 = vadd.xlane.f32.xlu0 %v403_v7 }
 0x423   :  { %v4991_v8 = vpop.eup %4990 }
 0x424   :  { %v406_v9 = vsel %vm237_vm4, %v4991_v8, 0.0  ;;  %v644_v20 = vpop.permute.xlu1 %643 }
 0x425   :  { %407 = vadd.xlane.f32.xlu0 %v406_v9 }
 0x43b   :  { %489 = vrot.lane.b32.xlu0 %v5243_v52, %s5097_s20 }
 0x43f   :  { %645 = vrot.lane.b32.xlu0 %v5243_v52, %s5098_s21 }
 0x4ae   :  { %v405_v10 = vpop.xlane.xlu0 %404 }
 0x4af   :  { %4992 = vrcp.f32 %v405_v10 }
 0x4b2   :  { %v408_v11 = vpop.xlane.xlu0 %407 }
 0x4b3   :  { %4994 = vrcp.f32 %v408_v11 }
 0x4b6   :  { %v490_v14 = vpop.permute.xlu0 %489 }
 0x4b9   :  { %v4993_v12 = vpop.eup %4992 }
 0x4ba   :  { %v411_v13 = vmul.f32 %v4993_v12, %v4989_v6  ;;  %v646_v19 = vpop.permute.xlu0 %645 }
 0x4bc   :  { %4539 = vmatmul.mubr.msk.f32.vlgmr.msra.gmra.mrb[6].mxu1 %vm237_vm4, %v411_v13 }
 0x4bd   :  { %v4995_v15 = vpop.eup %4994  ;;  %4542 = vmatpush3.msra.mxu1 %v490_v14  ;;  %4543 = vmatprep.mubr.msk.f32.mxu1 %vm5095_vm3, %v5094_v44 }
 0x4be   :  { %v412_v17 = vmul.f32 %v4995_v15, %v4991_v8  ;;  %4546 = vmatprep.subr.mxu1 %v5094_v44 }
 0x4c0   :  { %4544 = vmatmul.mubr.msk.f32.vlgmr.msra.gmra.mrb[8].mxu1 %vm237_vm4, %v412_v17 }
 0x4c1   :  { %4548 = vmatprep.mubr.msk.f32.mxu1 %vm5095_vm3, %v5094_v44 }
 0x4c4   :  { %4547 = vmatpush3.xpose.msk.msra.mxu1 %vm237_vm4, %v568_v16 }
 0x4c5   :  { %4551 = vmatprep.subr.mxu1 %v5094_v44 }
 0x4c7   :  { %4549 = vmatmul.mubr.msk.f32.vlgmr.msra.gmra.mrb[10].mxu1 %vm237_vm4, %v566_v18 }
 0x4c8   :  { %4552 = vmatpush3.xpose.msk.msra.mxu1 %vm237_vm4, %v646_v19  ;;  %4553 = vmatprep.mubr.msk.f32.mxu1 %vm5095_vm3, %v5094_v44 }
 0x4c9   :  { %4556 = vmatprep.subr.mxu1 %v5094_v44 }
 0x4cb   :  { %4554 = vmatmul.mubr.msk.f32.vlgmr.msra.gmra.mrb[12].mxu1 %vm237_vm4, %v644_v20 }
 0x4cc   :  { %4558 = vmatprep.mubr.msk.f32.mxu1 %vm5095_vm3, %v5094_v44 }
 0x58f   :  { %v5293_v21 = vpop.f32.mrb[6].mxu1 }
 0x590   :  { %v4540_v22 = vpop.f32.mrb[7].mxu1 }
 0x593   :  { %v5295_v23 = vpop.f32.mrb[8].mxu1 }
 0x594   :  { %v4545_v24 = vpop.f32.mrb[9].mxu1 }
 0x59a   :  { %v639_v25 = vpop.f32.mrb[10].mxu1 }
 0x59b   :  { %v721_v26 = vmul.f32 0.35355338, %v639_v25  ;;  %v4550_v27 = vpop.f32.mrb[11].mxu1 }
 0x59d   :  { %v723_v28 = vsel %vm237_vm4, %v721_v26, -inf }
 0x59e   :  { %724 = vmax.xlane.f32.xlu0 %v723_v28  ;;  %v717_v29 = vpop.f32.mrb[12].mxu1 }
 0x59f   :  { %v722_v30 = vmul.f32 0.35355338, %v717_v29  ;;  %v4555_v31 = vpop.f32.mrb[13].mxu1 }
 0x5a1   :  { %v726_v32 = vsel %vm237_vm4, %v722_v30, -inf }
 0x5a2   :  { %727 = vmax.xlane.f32.xlu1 %v726_v32 }
 0x5b3   :  { %745 = vrot.lane.b32.xlu1 %v5239_v51, %s5100_s23 }
 0x5b7   :  { %1061 = vrot.lane.b32.xlu1 %v5239_v51, %s5101_s24 }
 0x5bb   :  { %1059 = vrot.lane.b32.xlu1 %v5239_v51, %s5102_s25 }
 0x5bf   :  { %1137 = vrot.lane.b32.xlu1 %v5243_v52, %s5102_s25 }
 0x62b   :  { %v725_v33 = vpop.xlane.xlu0 %724 }
 0x62c   :  { %v729_v34 = vsub.f32 %v721_v26, %v725_v33  ;;  %v4207_v26 = vld [vmem:[%s5828_s3 + $0x30] sm:$0xff] }
 0x62d   :  { %4596 = vmatprep.subr.mxu0 %v4207_v26 }
 0x62e   :  { %v731_v35 = vmul.f32 1.442695, %v729_v34  ;;  %4597 = vmatpush3.msra.mxu0 %v4207_v26 }
 0x62f   :  { %v728_v36 = vpop.xlane.xlu1 %727  ;;  %4606 = vmatprep.subr.mxu0 %v5094_v44 }
 0x630   :  { %4996 = vpow2.f32 %v731_v35  ;;  %v730_v37 = vsub.f32 %v722_v30, %v728_v36 }
 0x632   :  { %v733_v38 = vmul.f32 1.442695, %v730_v37 }
 0x633   :  { %v746_v39 = vpop.permute.xlu1 %745 }
 0x634   :  { %4998 = vpow2.f32 %v733_v38  ;;  %4557 = vmatpush3.msra.mxu1 %v746_v39 }
 0x635   :  { %4561 = vmatprep.subr.mxu1 %v5094_v44 }
 0x637   :  { %v1062_v1 = vpop.permute.xlu1 %1061 }
 0x63a   :  { %v4997_v40 = vpop.eup %4996 }
 0x63b   :  { %v735_v41 = vsel %vm237_vm4, %v4997_v40, 0.0  ;;  %v1060_v2 = vpop.permute.xlu1 %1059 }
 0x63c   :  { %736 = vadd.xlane.f32.xlu0 %v735_v41 }
 0x63e   :  { %v4999_v48 = vpop.eup %4998 }
 0x63f   :  { %v738_v49 = vsel %vm237_vm4, %v4999_v48, 0.0  ;;  %v1138_v4 = vpop.permute.xlu1 %1137 }
 0x640   :  { %739 = vadd.xlane.f32.xlu0 %v738_v49 }
 0x656   :  { %821 = vrot.lane.b32.xlu0 %v5243_v52, %s5100_s23 }
 0x65a   :  { %1139 = vrot.lane.b32.xlu0 %v5243_v52, %s5101_s24 }
 0x6c9   :  { %v737_v50 = vpop.xlane.xlu0 %736 }
 0x6ca   :  { %5000 = vrcp.f32 %v737_v50 }
 0x6cd   :  { %v740_v53 = vpop.xlane.xlu0 %739 }
 0x6ce   :  { %5002 = vrcp.f32 %v740_v53 }
 0x6d1   :  { %v822_v56 = vpop.permute.xlu0 %821 }
 0x6d4   :  { %v5001_v54 = vpop.eup %5000 }
 0x6d5   :  { %v743_v55 = vmul.f32 %v5001_v54, %v4997_v40  ;;  %v1140_v3 = vpop.permute.xlu0 %1139 }
 0x6d7   :  { %4559 = vmatmul.mubr.msk.f32.vlgmr.msra.gmra.mrb[14].mxu1 %vm237_vm4, %v743_v55 }
 0x6d8   :  { %v5003_v57 = vpop.eup %5002  ;;  %4562 = vmatpush3.msra.mxu1 %v822_v56  ;;  %4563 = vmatprep.mubr.msk.f32.mxu1 %vm5095_vm3, %v5094_v44 }
 0x6d9   :  { %v744_v58 = vmul.f32 %v5003_v57, %v4999_v48  ;;  %4566 = vmatprep.subr.mxu1 %v4206_v59 }
 0x6db   :  { %4564 = vmatmul.mubr.msk.f32.vlgmr.msra.gmra.mrb[16].mxu1 %vm237_vm4, %v744_v58 }
 0x6dc   :  { %4567 = vmatpush3.msra.mxu1 %v4206_v59 }
 0x6dd   :  { %4571 = vmatprep.subr.mxu1 %v4205_v60 }
 0x7aa   :  { %v817_v61 = vpop.f32.mrb[14].mxu1 }
 0x7ab   :  { %v4560_v62 = vpop.f32.mrb[15].mxu1  ;;  %4568 = vmatprep.mubr.msk.f32.mxu1 %vm237_vm4, %v817_v61 }
 0x7ae   :  { %v893_v63 = vpop.f32.mrb[16].mxu1 }
 0x7af   :  { %v4565_v0 = vpop.f32.mrb[17].mxu1  ;;  %4569 = vmatmul.mubr.msk.f32.vlgmr.msra.gmra.mrb[18].mxu1 %vm237_vm4, %v893_v63 }
 0x7b0   :  { %4572 = vmatpush3.msra.mxu1 %v4205_v60  ;;  %4573 = vmatprep.mubr.msk.f32.mxu1 %vm237_vm4, %v5293_v21 }
 0x7b1   :  { %4576 = vmatprep.subr.mxu1 %v5094_v44 }
 0x7b7   :  { %4574 = vmatmul.mubr.msk.f32.vlgmr.msra.gmra.mrb[18].mxu1 %vm237_vm4, %v5295_v23 }
 0x7b8   :  { %4577 = vmatpush3.xpose.msk.msra.mxu1 %vm237_vm4, %v1062_v1  ;;  %4578 = vmatprep.mubr.msk.f32.mxu1 %vm5095_vm3, %v5094_v44 }
 0x7b9   :  { %4581 = vmatprep.subr.mxu1 %v5094_v44 }
 0x7bb   :  { %4579 = vmatmul.mubr.msk.f32.vlgmr.msra.gmra.mrb[20].mxu1 %vm237_vm4, %v1060_v2 }
 0x7bc   :  { %4582 = vmatpush3.xpose.msk.msra.mxu1 %vm237_vm4, %v1140_v3  ;;  %4583 = vmatprep.mubr.msk.f32.mxu1 %vm5095_vm3, %v5094_v44 }
 0x7bd   :  { %4586 = vmatprep.subr.mxu1 %v5094_v44 }
 0x7bf   :  { %4584 = vmatmul.mubr.msk.f32.vlgmr.msra.gmra.mrb[22].mxu1 %vm237_vm4, %v1138_v4 }
 0x7c0   :  { %4588 = vmatprep.mubr.msk.f32.mxu1 %vm5095_vm3, %v5094_v44 }
 0x88a   :  { %v5343_v5 = vpop.f32.mrb[18].mxu1 }
 0x88b   :  { %v5345_v6 = vpop.f32.mrb[19].mxu1 }
 0x88e   :  { %v1133_v7 = vpop.f32.mrb[20].mxu1 }
 0x88f   :  { %v1215_v8 = vmul.f32 0.35355338, %v1133_v7  ;;  %v4580_v9 = vpop.f32.mrb[21].mxu1 }
 0x891   :  { %v1217_v10 = vsel %vm237_vm4, %v1215_v8, -inf }
 0x892   :  { %1218 = vmax.xlane.f32.xlu0 %v1217_v10  ;;  %v1211_v11 = vpop.f32.mrb[22].mxu1  ;;  %v4208_v10 = vld [vmem:[%s5828_s3 + $0x38] sm:$0xff] }
 0x893   :  { %v1216_v12 = vmul.f32 0.35355338, %v1211_v11  ;;  %v4585_v13 = vpop.f32.mrb[23].mxu1 }
 0x895   :  { %v1220_v14 = vsel %vm237_vm4, %v1216_v12, -inf }
 0x896   :  { %1221 = vmax.xlane.f32.xlu1 %v1220_v14 }
 0x8a7   :  { %1239 = vrot.lane.b32.xlu1 %v5239_v51, %s5103_s30 }
 0x8ab   :  { %1476 = vrot.lane.b32.xlu1 %v5239_v51, %s5104_s7 }
 0x8af   :  { %1554 = vrot.lane.b32.xlu1 %v5243_v52, %s5104_s7 }
 0x8b3   :  { %1552 = vrot.lane.b32.xlu1 %v5243_v52, %s5105_s8 }
 0x91f   :  { %v1219_v15 = vpop.xlane.xlu0 %1218 }
 0x920   :  { %v1223_v16 = vsub.f32 %v1215_v8, %v1219_v15 }
 0x922   :  { %v1225_v17 = vmul.f32 1.442695, %v1223_v16 }
 0x923   :  { %v1222_v18 = vpop.xlane.xlu1 %1221 }
 0x924   :  { %5004 = vpow2.f32 %v1225_v17  ;;  %v1224_v19 = vsub.f32 %v1216_v12, %v1222_v18  ;;  %v1893_v17 = vsub.s32 1, %v5226_v45 }
 0x926   :  { %v1227_v20 = vmul.f32 1.442695, %v1224_v19 }
 0x927   :  { %v1240_v21 = vpop.permute.xlu1 %1239 }
 0x928   :  { %5006 = vpow2.f32 %v1227_v20  ;;  %4587 = vmatpush3.msra.mxu1 %v1240_v21  ;;  %v1894_v21 = vrot.slane %v5234_v47, %v1893_v17 }
 0x929   :  { %4591 = vmatprep.subr.mxu1 %v5094_v44 }
 0x92b   :  { %v1477_v34 = vpop.permute.xlu1 %1476 }
 0x92e   :  { %v5005_v22 = vpop.eup %5004 }
 0x92f   :  { %v1229_v23 = vsel %vm237_vm4, %v5005_v22, 0.0  ;;  %v1555_v38 = vpop.permute.xlu1 %1554 }
 0x930   :  { %1230 = vadd.xlane.f32.xlu0 %v1229_v23 }
 0x932   :  { %v5007_v24 = vpop.eup %5006 }
 0x933   :  { %v1232_v25 = vsel %vm237_vm4, %v5007_v24, 0.0  ;;  %v1553_v41 = vpop.permute.xlu1 %1552 }
 0x934   :  { %1233 = vadd.xlane.f32.xlu0 %v1232_v25 }
 0x94a   :  { %1315 = vrot.lane.b32.xlu0 %v5243_v52, %s5103_s30 }
 0x94e   :  { %1474 = vrot.lane.b32.xlu0 %v5239_v51, %s5105_s8 }
 0x9bd   :  { %v1231_v27 = vpop.xlane.xlu0 %1230 }
 0x9be   :  { %5008 = vrcp.f32 %v1231_v27 }
 0x9c1   :  { %v1234_v28 = vpop.xlane.xlu0 %1233 }
 0x9c2   :  { %5010 = vrcp.f32 %v1234_v28 }
 0x9c5   :  { %v1316_v31 = vpop.permute.xlu0 %1315 }
 0x9c8   :  { %v5009_v29 = vpop.eup %5008 }
 0x9c9   :  { %v1237_v30 = vmul.f32 %v5009_v29, %v5005_v22  ;;  %v1475_v35 = vpop.permute.xlu0 %1474 }
 0x9cb   :  { %4589 = vmatmul.mubr.msk.f32.vlgmr.msra.gmra.mrb[24].mxu1 %vm237_vm4, %v1237_v30 }
 0x9cc   :  { %v5011_v32 = vpop.eup %5010  ;;  %4592 = vmatpush3.msra.mxu1 %v1316_v31  ;;  %4593 = vmatprep.mubr.msk.f32.mxu1 %vm5095_vm3, %v5094_v44 }
 0x9cd   :  { %v1238_v33 = vmul.f32 %v5011_v32, %v5007_v24  ;;  %4601 = vmatprep.subr.mxu1 %v5094_v44 }
 0x9cf   :  { %4594 = vmatmul.mubr.msk.f32.vlgmr.msra.gmra.mrb[26].mxu1 %vm237_vm4, %v1238_v33 }
 0x9d0   :  { %4603 = vmatprep.mubr.msk.f32.mxu1 %vm5095_vm3, %v5094_v44 }
 0x9d3   :  { %4602 = vmatpush3.xpose.msk.msra.mxu1 %vm237_vm4, %v1477_v34 }
 0x9d4   :  { %4611 = vmatprep.subr.mxu1 %v5094_v44 }
 0x9d6   :  { %4604 = vmatmul.mubr.msk.f32.vlgmr.msra.gmra.mrb[28].mxu1 %vm237_vm4, %v1475_v35  ;;  %v4209_v35 = vld [vmem:[%s5828_s3 + $0x40] sm:$0xff] }
 0x9d7   :  { %4613 = vmatprep.mubr.msk.f32.mxu1 %vm5095_vm3, %v5094_v44 }
 0xa9e   :  { %v1311_v36 = vpop.f32.mrb[24].mxu1 }
 0xa9f   :  { %v4590_v37 = vpop.f32.mrb[25].mxu1  ;;  %4598 = vmatprep.mubr.msk.f32.mxu0 %vm237_vm4, %v1311_v36  ;;  %v4210_v36 = vld [vmem:[%s5828_s3 + $0x48] sm:$0xff] }
 0xaa0   :  { %v4869_v37 = vpack.c.bf16 %v4210_v36, %v4209_v35 }
 0xaa2   :  { %v1387_v39 = vpop.f32.mrb[26].mxu1 }
 0xaa3   :  { %v4595_v40 = vpop.f32.mrb[27].mxu1  ;;  %4599 = vmatmul.mubr.msk.f32.vlgmr.msra.gmra.mrb[2].mxu0 %vm237_vm4, %v1387_v39  ;;  %v4212_v39 = vld [vmem:[%s5828_s3 + $0x58] sm:$0xff] }
 0xaa4   :  { %4607 = vmatpush3.xpose.msk.msra.mxu0 %vm237_vm4, %v1555_v38  ;;  %4608 = vmatprep.mubr.msk.f32.mxu0 %vm5095_vm3, %v5094_v44  ;;  %v4211_v38 = vld [vmem:[%s5828_s3 + $0x50] sm:$0xff] }
 0xaa5   :  { %4616 = vmatprep.subr.mxu0 %v5094_v44  ;;  %v4873_v40 = vpack.c.bf16 %v4212_v39, %v4211_v38 }
 0xaa7   :  { %4609 = vmatmul.mubr.msk.f32.vlgmr.msra.gmra.mrb[4].mxu0 %vm237_vm4, %v1553_v41  ;;  %v2023_v41 = vld [vmem:[%s5829_s4] sm:$0xff] }
 0xaa8   :  { %4618 = vmatprep.mubr.msk.f32.mxu0 %vm5095_vm3, %v5094_v44 }
 0xaa9   :  { %v1548_v48 = vpop.f32.mrb[28].mxu1 }
 0xaaa   :  { %v1630_v49 = vmul.f32 0.35355338, %v1548_v48  ;;  %v4605_v50 = vpop.f32.mrb[29].mxu1  ;;  %v2024_v48 = vld [vmem:[%s5829_s4 + $0x8] sm:$0xff] }
 0xaab   :  { %v4877_v50 = vpack.c.bf16 %v2024_v48, %v2023_v41 }
 0xaac   :  { %v1632_v53 = vsel %vm237_vm4, %v1630_v49, -inf }
 0xaad   :  { %1633 = vmax.xlane.f32.xlu0 %v1632_v53  ;;  %v2026_v53 = vld [vmem:[%s5829_s4 + $0x18] sm:$0xff] }
 0xb3a   :  { %v1634_v54 = vpop.xlane.xlu0 %1633 }
 0xb3b   :  { %v1638_v55 = vsub.f32 %v1630_v49, %v1634_v54  ;;  %v2025_v49 = vld [vmem:[%s5829_s4 + $0x10] sm:$0xff] }
 0xb3c   :  { %v4881_v54 = vpack.c.bf16 %v2026_v53, %v2025_v49 }
 0xb3d   :  { %v1640_v56 = vmul.f32 1.442695, %v1638_v55  ;;  %v2027_v55 = vld [vmem:[%s5829_s4 + $0x20] sm:$0xff] }
 0xb3f   :  { %5012 = vpow2.f32 %v1640_v56  ;;  %v2028_v56 = vld [vmem:[%s5829_s4 + $0x28] sm:$0xff] }
 0xb49   :  { %v5013_v57 = vpop.eup %5012 }
 0xb4a   :  { %v1644_v58 = vsel %vm237_vm4, %v5013_v57, 0.0 }
 0xb4b   :  { %1645 = vadd.xlane.f32.xlu0 %v1644_v58  ;;  %v2029_v58 = vld [vmem:[%s5829_s4 + $0x30] sm:$0xff] }
 0xb7a   :  { %v1626_v59 = vpop.f32.mrb[4].mxu0 }
 0xb7b   :  { %v1631_v60 = vmul.f32 0.35355338, %v1626_v59  ;;  %v4610_v61 = vpop.f32.mrb[5].mxu0  ;;  %v2030_v59 = vld [vmem:[%s5829_s4 + $0x38] sm:$0xff] }
 0xb7c   :  { %v2031_v61 = vld [vmem:[%s5829_s4 + $0x40] sm:$0xff] }
 0xb7d   :  { %v1635_v62 = vsel %vm237_vm4, %v1631_v60, -inf }
 0xb7e   :  { %1636 = vmax.xlane.f32.xlu1 %v1635_v62  ;;  %v2032_v62 = vld [vmem:[%s5829_s4 + $0x48] sm:$0xff] }
 0xb8f   :  { %1654 = vrot.lane.b32.xlu1 %v5239_v51, %s5106_s11 }
 0xbd8   :  { %v1646_v63 = vpop.xlane.xlu0 %1645 }
 0xbd9   :  { %5014 = vrcp.f32 %v1646_v63  ;;  %v4893_v63 = vpack.c.bf16 %v2032_v62, %v2031_v61  ;;  %v4251_v61 = vld [vmem:[%s5828_s3 + $0x68] sm:$0xff] }
 0xbe3   :  { %v5015_v1 = vpop.eup %5014 }
 0xbe4   :  { %v1652_v4 = vmul.f32 %v5015_v1, %v5013_v57  ;;  %v4885_v57 = vpack.c.bf16 %v2028_v56, %v2027_v55  ;;  %v2034_v1 = vld [vmem:[%s5829_s4 + $0x58] sm:$0xff] }
 0xc0b   :  { %v1637_v0 = vpop.xlane.xlu1 %1636 }
 0xc0c   :  { %v1639_v2 = vsub.f32 %v1631_v60, %v1637_v0  ;;  %v4889_v60 = vpack.c.bf16 %v2030_v59, %v2029_v58  ;;  %v2033_v0 = vld [vmem:[%s5829_s4 + $0x50] sm:$0xff] }
 0xc0e   :  { %v1642_v3 = vmul.f32 1.442695, %v1639_v2  ;;  %v4897_v2 = vpack.c.bf16 %v2034_v1, %v2033_v0  ;;  %v4253_v0 = vld [vmem:[%s5828_s3 + $0x78] sm:$0xff] }
 0xc0f   :  { %v1655_v7 = vpop.permute.xlu1 %1654 }
 0xc10   :  { %5016 = vpow2.f32 %v1642_v3  ;;  %4612 = vmatpush3.msra.mxu1 %v1655_v7  ;;  %v2035_v3 = vld [vmem:[%s5829_s4 + $0x60] sm:$0xff] }
 0xc11   :  { %4614 = vmatmul.mubr.msk.f32.vlgmr.msra.gmra.mrb[30].mxu1 %vm237_vm4, %v1652_v4  ;;  %4870 = vmatprep.subr.bf16.mxu1 %v4869_v37  ;;  %v2036_v4 = vld [vmem:[%s5829_s4 + $0x68] sm:$0xff] }
 0xc12   :  { %4872 = vmatpush3.bf16.msra.mxu1 %v4869_v37  ;;  %v4901_v7 = vpack.c.bf16 %v2036_v4, %v2035_v3 }
 0xc13   :  { %4874 = vmatprep.subr.bf16.mxu1 %v4873_v40 }
 0xc16   :  { %4876 = vmatpush3.bf16.msra.mxu1 %v4873_v40 }
 0xc1a   :  { %v5017_v8 = vpop.eup %5016 }
 0xc1b   :  { %v1647_v9 = vsel %vm237_vm4, %v5017_v8, 0.0 }
 0xc1c   :  { %1648 = vadd.xlane.f32.xlu0 %v1647_v9 }
 0xc32   :  { %1730 = vrot.lane.b32.xlu0 %v5243_v52, %s5106_s11 }
 0xca9   :  { %v1649_v51 = vpop.xlane.xlu0 %1648 }
 0xcaa   :  { %5018 = vrcp.f32 %v1649_v51 }
 0xcad   :  { %v1731_v11 = vpop.permute.xlu0 %1730 }
 0xcae   :  { %4617 = vmatpush3.msra.mxu0 %v1731_v11 }
 0xcaf   :  { %4621 = vmatprep.subr.mxu0 %v4208_v10 }
 0xcb4   :  { %v5019_v12 = vpop.eup %5018 }
 0xcb5   :  { %v1653_v13 = vmul.f32 %v5019_v12, %v5017_v8 }
 0xcb7   :  { %4619 = vmatmul.mubr.msk.f32.vlgmr.msra.gmra.mrb[6].mxu0 %vm237_vm4, %v1653_v13  ;;  %v1926_v13 = vsub.s32 2, %v5226_v45 }
 0xcb8   :  { %4622 = vmatpush3.msra.mxu0 %v4208_v10 }
 0xcb9   :  { %4878 = vmatprep.subr.bf16.mxu0 %v4877_v50 }
 0xce4   :  { %v1726_v14 = vpop.f32.mrb[30].mxu1 }
 0xce5   :  { %v4615_v15 = vpop.f32.mrb[31].mxu1  ;;  %4623 = vmatprep.mubr.msk.f32.mxu0 %vm237_vm4, %v1726_v14  ;;  %v1932_v14 = vsub.s32 3, %v5226_v45 }
 0xce6   :  { %v1927_v15 = vrot.slane %v5234_v47, %v1926_v13 }
 0xd8a   :  { %v1802_v16 = vpop.f32.mrb[6].mxu0 }
 0xd8b   :  { %v4620_v52 = vpop.f32.mrb[7].mxu0  ;;  %4624 = vmatmul.mubr.msk.f32.vlgmr.msra.gmra.mrb[2].mxu0 %vm237_vm4, %v1802_v16 }
 0xd8c   :  { %4880 = vmatpush3.bf16.msra.mxu0 %v4877_v50 }
 0xd8d   :  { %4882 = vmatprep.subr.bf16.mxu0 %v4881_v54 }
 0xd90   :  { %4884 = vmatpush3.bf16.msra.mxu0 %v4881_v54 }
 0xd91   :  { %4886 = vmatprep.subr.bf16.mxu0 %v4885_v57 }
 0xd94   :  { %4888 = vmatpush3.bf16.msra.mxu0 %v4885_v57 }
 0xd95   :  { %4890 = vmatprep.subr.bf16.mxu0 %v4889_v60 }
 0xd98   :  { %4892 = vmatpush3.bf16.msra.mxu0 %v4889_v60  ;;  %v4250_v60 = vld [vmem:[%s5828_s3 + $0x60] sm:$0xff] }
 0xd99   :  { %4894 = vmatprep.subr.bf16.mxu0 %v4893_v63  ;;  %v4909_v62 = vpack.c.bf16 %v4251_v61, %v4250_v60 }
 0xd9b   :  { %4910 = vmatprep.subr.bf16.mxu1 %v4909_v62 }
 0xd9c   :  { %4896 = vmatpush3.bf16.msra.mxu0 %v4893_v63  ;;  %v4252_v63 = vld [vmem:[%s5828_s3 + $0x70] sm:$0xff] }
 0xd9d   :  { %4898 = vmatprep.subr.bf16.mxu0 %v4897_v2  ;;  %v4913_v1 = vpack.c.bf16 %v4253_v0, %v4252_v63 }
 0xda0   :  { %4900 = vmatpush3.bf16.msra.mxu0 %v4897_v2 }
 0xda1   :  { %4902 = vmatprep.subr.bf16.mxu0 %v4901_v7 }
 0xda4   :  { %4904 = vmatpush3.bf16.msra.mxu0 %v4901_v7 }
 0xe5e   :  { %v4625_v18 = vpop.f32.mrb[2].mxu0 }
 0xe5f   :  { %v4957_v19 = vadd.f32 %v4625_v18, %v5343_v5  ;;  %v1878_v20 = vpop.f32.mrb[3].mxu0 }
 0xe60   :  { %v4958_v22 = vadd.f32 %v1878_v20, %v5345_v6  ;;  %v1933_v20 = vrot.slane %v5234_v47, %v1932_v14 }
 0xe61   :  { %v1890_v23 = vadd.f32 %v4957_v19, %v5219_v43 }
 0xe62   :  { %v1889_v24 = vadd.f32 %v4958_v22, %v5217_v42 }
 0xe63   :  { %v1896_v25 = vadd.f32 %v1894_v21, %v1890_v23 }
 0xe64   :  { %v1895_v26 = vadd.f32 %v1894_v21, %v1889_v24 }
 0xe65   :  { %v1900_v27 = vsel %vm152_vm2, %v1896_v25, 0.0 }
 0xe66   :  { %1901 = vadd.xlane.f32.xlu0 %v1900_v27  ;;  %v1897_v28 = vsel %vm152_vm2, %v1895_v26, 0.0 }
 0xe67   :  { %1898 = vadd.xlane.f32.xlu1 %v1897_v28  ;;  %v1938_v28 = vsub.s32 4, %v5226_v45 }
 0xef3   :  { %v1902_v5 = vpop.xlane.xlu0 %1901 }
 0xef4   :  { %v1905_v29 = vmul.f32 0.03125, %v1902_v5  ;;  %v1899_v30 = vpop.xlane.xlu1 %1898  ;;  %v1939_v5 = vrot.slane %v5234_v47, %v1938_v28 }
 0xef5   :  { %v1904_v31 = vmul.f32 0.03125, %v1899_v30 }
 0xef6   :  { %v5414_v32 = vsub.f32 %v1896_v25, %v1905_v29  ;;  %v2037_v25 = vld [vmem:[%s5829_s4 + $0x70] sm:$0xff] }
 0xef7   :  { %v5416_v33 = vsub.f32 %v1895_v26, %v1904_v31  ;;  %v2038_v26 = vld [vmem:[%s5829_s4 + $0x78] sm:$0xff] }
 0xef8   :  { %v1909_v43 = vmul.f32 %v5414_v32, %v5414_v32  ;;  %v4905_v27 = vpack.c.bf16 %v2038_v26, %v2037_v25 }
 0xef9   :  { %v1908_v42 = vmul.f32 %v5416_v33, %v5416_v33 }
 0xefa   :  { %v1913_v6 = vsel %vm152_vm2, %v1909_v43, 0.0  ;;  %4906 = vmatprep.subr.bf16.mxu0 %v4905_v27 }
 0xefb   :  { %1914 = vadd.xlane.f32.xlu0 %v1913_v6  ;;  %v1910_v34 = vsel %vm152_vm2, %v1908_v42, 0.0  ;;  %4908 = vmatpush3.bf16.msra.mxu0 %v4905_v27  ;;  %v2041_v42 = vsub.s32 5, %v5226_v45 }
 0xefc   :  { %1911 = vadd.xlane.f32.xlu1 %v1910_v34  ;;  %4713 = vmatprep.subr.mxu0 %v5094_v44 }
 0xefd   :  { %v2042_v6 = vrot.slane %v5234_v47, %v2041_v42 }
 0xf88   :  { %v1915_v8 = vpop.xlane.xlu0 %1914 }
 0xf89   :  { %v1917_v9 = vmul.f32 0.03125, %v1915_v8  ;;  %v1912_v51 = vpop.xlane.xlu1 %1911 }
 0xf8a   :  { %v1916_v10 = vmul.f32 0.03125, %v1912_v51  ;;  %v2148_v51 = vsub.s32 6, %v5226_v45 }
 0xf8b   :  { %v1919_v11 = vadd.f32 1e-05, %v1917_v9 }
 0xf8c   :  { %v1918_v12 = vadd.f32 1e-05, %v1916_v10  ;;  %v2154_v10 = vsub.s32 7, %v5226_v45 }
 0xf8d   :  { %5020 = vrsqrt.f32 %v1919_v11  ;;  %v2149_v11 = vrot.slane %v5234_v47, %v2148_v51 }
 0xf8e   :  { %5022 = vrsqrt.f32 %v1918_v12 }
 0xf97   :  { %v5021_v16 = vpop.eup %5020 }
 0xf98   :  { %v5023_v52 = vpop.eup %5022  ;;  %v1923_v18 = vmul.f32 %v5021_v16, %v5414_v32 }
 0xf99   :  { %v1922_v19 = vmul.f32 %v5023_v52, %v5416_v33 }
 0xf9a   :  { %v1929_v21 = vmul.f32 %v1927_v15, %v1923_v18  ;;  %v2155_v18 = vrot.slane %v5234_v47, %v2154_v10 }
 0xf9b   :  { %v1928_v22 = vmul.f32 %v1927_v15, %v1922_v19 }
 0xf9c   :  { %v1935_v24 = vadd.f32 %v1933_v20, %v1929_v21 }
 0xf9d   :  { %v1934_v23 = vadd.f32 %v1933_v20, %v1928_v22 }
 0xf9f   :  { %4634 = vmatprep.mubr.msk.f32.mxu1 %vm152_vm2, %v1934_v23 }
 0xfa0   :  { %4635 = vmatmul.mubr.msk.f32.vlgmr.msra.gmra.mrb[32].mxu1 %vm152_vm2, %v1935_v24 }
 0xfa1   :  { %4912 = vmatpush3.bf16.msra.mxu1 %v4909_v62 }
 0xfa2   :  { %4914 = vmatprep.subr.bf16.mxu1 %v4913_v1 }
 0xfa5   :  { %4916 = vmatpush3.bf16.msra.mxu1 %v4913_v1 }
 0xfa6   :  { %4683 = vmatprep.subr.mxu1 %v5094_v44 }
0x1073   :  { %v4636_v29 = vpop.f32.mrb[32].mxu1 }
0x1074   :  { %v2018_v30 = vadd.f32 %v4636_v29, %v1939_v5  ;;  %v2012_v31 = vpop.f32.mrb[33].mxu1 }
0x1075   :  { %v2013_v32 = vadd.f32 %v2012_v31, %v1939_v5 }
0x1076   :  { %v2022_v43 = vmax.f32 %v2018_v30, 0.0 }
0x1077   :  { %v2021_v33 = vmax.f32 %v2013_v32, 0.0 }
0x1079   :  { %4669 = vmatprep.mubr.f32.mxu0 %v2021_v33 }
0x107a   :  { %4670 = vmatmul.mubr.f32.vlgmr.msra.gmra.mrb[8].mxu0 %v2022_v43 }
0x107b   :  { %4715 = vmatprep.mubr.msk.f32.mxu0 %vm5095_vm3, %v5094_v44 }
0x114d   :  { %v4671_v34 = vpop.f32.mrb[8].mxu0 }
0x114e   :  { %v2115_v35 = vadd.f32 %v4671_v34, %v2042_v6  ;;  %v2109_v36 = vpop.f32.mrb[9].mxu0 }
0x114f   :  { %v2110_v37 = vadd.f32 %v2109_v36, %v2042_v6 }
0x1150   :  { %v2119_v38 = vadd.f32 %v2115_v35, %v1935_v24 }
0x1151   :  { %v2118_v39 = vadd.f32 %v2110_v37, %v1934_v23  ;;  %v5545_v23 = vld [vmem:[%s5830_s5 + $0x8] sm:$0xff] }
0x1152   :  { %v2123_v40 = vsel %vm152_vm2, %v2119_v38, 0.0  ;;  %v2178_v47 = vrot.slane %v5545_v23, %v150_v46 }
0x1153   :  { %2124 = vadd.xlane.f32.xlu0 %v2123_v40  ;;  %v2120_v41 = vsel %vm152_vm2, %v2118_v39, 0.0 }
0x1154   :  { %2121 = vadd.xlane.f32.xlu1 %v2120_v41 }
0x11e0   :  { %v2125_v48 = vpop.xlane.xlu0 %2124 }
0x11e1   :  { %v2127_v49 = vmul.f32 0.03125, %v2125_v48  ;;  %v2122_v50 = vpop.xlane.xlu1 %2121 }
0x11e2   :  { %v2126_v53 = vmul.f32 0.03125, %v2122_v50 }
0x11e3   :  { %v2129_v54 = vsub.f32 %v2119_v38, %v2127_v49 }
0x11e4   :  { %v2128_v55 = vsub.f32 %v2118_v39, %v2126_v53 }
0x11e5   :  { %v2131_v56 = vmul.f32 %v2129_v54, %v2129_v54 }
0x11e6   :  { %v2130_v57 = vmul.f32 %v2128_v55, %v2128_v55 }
0x11e7   :  { %v2135_v58 = vsel %vm152_vm2, %v2131_v56, 0.0 }
0x11e8   :  { %2136 = vadd.xlane.f32.xlu0 %v2135_v58  ;;  %v2132_v59 = vsel %vm152_vm2, %v2130_v57, 0.0 }
0x11e9   :  { %2133 = vadd.xlane.f32.xlu1 %v2132_v59 }
0x1275   :  { %v2137_v2 = vpop.xlane.xlu0 %2136 }
0x1276   :  { %v2139_v3 = vmul.f32 0.03125, %v2137_v2  ;;  %v2134_v4 = vpop.xlane.xlu1 %2133 }
0x1277   :  { %v2138_v7 = vmul.f32 0.03125, %v2134_v4 }
0x1278   :  { %v2141_v8 = vadd.f32 1e-05, %v2139_v3 }
0x1279   :  { %v2140_v9 = vadd.f32 1e-05, %v2138_v7 }
0x127a   :  { %5024 = vrsqrt.f32 %v2141_v8 }
0x127b   :  { %5026 = vrsqrt.f32 %v2140_v9 }
0x1284   :  { %v5025_v12 = vpop.eup %5024 }
0x1285   :  { %v5027_v15 = vpop.eup %5026  ;;  %v2145_v16 = vmul.f32 %v5025_v12, %v2129_v54 }
0x1286   :  { %v2144_v52 = vmul.f32 %v5027_v15, %v2128_v55 }
0x1287   :  { %v2151_v19 = vmul.f32 %v2149_v11, %v2145_v16 }
0x1288   :  { %v2150_v20 = vmul.f32 %v2149_v11, %v2144_v52 }
0x1289   :  { %v5534_v22 = vadd.f32 %v2155_v18, %v2151_v19 }
0x128a   :  { %v5532_v21 = vadd.f32 %v2155_v18, %v2150_v20 }
0x128c   :  { %4680 = vmatprep.mubr.msk.f32.mxu1 %vm152_vm2, %v5532_v21 }
0x128d   :  { %4681 = vmatmul.mubr.msk.f32.vlgmr.msra.gmra.mrb[34].mxu1 %vm152_vm2, %v5534_v22 }
0x128e   :  { %4685 = vmatprep.mubr.msk.f32.mxu1 %vm5095_vm3, %v5094_v44 }
0x1360   :  { %v4682_v24 = vpop.f32.mrb[34].mxu1 }
0x1361   :  { %v5550_v25 = vadd.f32 %v4682_v24, %v2178_v47  ;;  %v2251_v26 = vpop.f32.mrb[35].mxu1 }
0x1362   :  { %v5552_v27 = vadd.f32 %v2251_v26, %v2178_v47 }
0x1363   :  { %2338 = vrot.lane.b32.xlu0 %v5550_v25, %s5096_s19 }
0x1364   :  { %2261 = vrot.lane.b32.xlu1 %v5552_v27, %s5096_s19 }
0x13d5   :  { %v2339_v29 = vpop.permute.xlu0 %2338 }
0x13d6   :  { %v2262_v5 = vpop.permute.xlu1 %2261 }
0x13d7   :  { %4684 = vmatpush3.xpose.msk.msra.mxu1 %vm237_vm4, %v2262_v5 }
0x13d8   :  { %4688 = vmatprep.subr.mxu1 %v5094_v44 }
0x13da   :  { %4686 = vmatmul.mubr.msk.f32.vlgmr.msra.gmra.mrb[36].mxu1 %vm237_vm4, %v5552_v27 }
0x13db   :  { %4689 = vmatpush3.xpose.msk.msra.mxu1 %vm237_vm4, %v2339_v29  ;;  %4690 = vmatprep.mubr.msk.f32.mxu1 %vm5095_vm3, %v5094_v44 }
0x13dc   :  { %4693 = vmatprep.subr.mxu1 %v5094_v44 }
0x13de   :  { %4691 = vmatmul.mubr.msk.f32.vlgmr.msra.gmra.mrb[38].mxu1 %vm237_vm4, %v5550_v25 }
0x13df   :  { %4695 = vmatprep.mubr.msk.f32.mxu1 %vm5095_vm3, %v5094_v44 }
0x14ad   :  { %v2333_v46 = vpop.f32.mrb[36].mxu1 }
0x14ae   :  { %v2414_v30 = vmul.f32 0.35355338, %v2333_v46  ;;  %v4687_v31 = vpop.f32.mrb[37].mxu1 }
0x14b0   :  { %v2416_v32 = vsel %vm237_vm4, %v2414_v30, -inf }
0x14b1   :  { %2417 = vmax.xlane.f32.xlu1 %v2416_v32  ;;  %v2410_v33 = vpop.f32.mrb[38].mxu1 }
0x14b2   :  { %v2415_v43 = vmul.f32 0.35355338, %v2410_v33  ;;  %v4692_v6 = vpop.f32.mrb[39].mxu1 }
0x14b4   :  { %v2419_v34 = vsel %vm237_vm4, %v2415_v43, -inf }
0x14b5   :  { %2420 = vmax.xlane.f32.xlu0 %v2419_v34 }
0x14c2   :  { %2438 = vrot.lane.b32.xlu1 %v5552_v27, %s5097_s20 }
0x153e   :  { %v2418_v35 = vpop.xlane.xlu1 %2417 }
0x153f   :  { %v2422_v36 = vsub.f32 %v2414_v30, %v2418_v35 }
0x1541   :  { %v2424_v37 = vmul.f32 1.442695, %v2422_v36 }
0x1542   :  { %v2439_v38 = vpop.permute.xlu1 %2438  ;;  %v2421_v39 = vpop.xlane.xlu0 %2420 }
0x1543   :  { %5028 = vpow2.f32 %v2424_v37  ;;  %v2423_v40 = vsub.f32 %v2415_v43, %v2421_v39  ;;  %4694 = vmatpush3.msra.mxu1 %v2439_v38 }
0x1544   :  { %4698 = vmatprep.subr.mxu1 %v5094_v44 }
0x1545   :  { %v2426_v41 = vmul.f32 1.442695, %v2423_v40 }
0x1547   :  { %5030 = vpow2.f32 %v2426_v41 }
0x154d   :  { %v5029_v48 = vpop.eup %5028 }
0x154e   :  { %v2428_v49 = vsel %vm237_vm4, %v5029_v48, 0.0 }
0x154f   :  { %2429 = vadd.xlane.f32.xlu1 %v2428_v49 }
0x1551   :  { %v5031_v50 = vpop.eup %5030 }
0x1552   :  { %v2431_v53 = vsel %vm237_vm4, %v5031_v50, 0.0 }
0x1553   :  { %2432 = vadd.xlane.f32.xlu0 %v2431_v53 }
0x1560   :  { %2592 = vrot.lane.b32.xlu1 %v5552_v27, %s5098_s21 }
0x1564   :  { %2590 = vrot.lane.b32.xlu1 %v5552_v27, %s5099_s22 }
0x1568   :  { %2668 = vrot.lane.b32.xlu1 %v5550_v25, %s5099_s22 }
0x1569   :  { %2514 = vrot.lane.b32.xlu0 %v5550_v25, %s5097_s20 }
0x156c   :  { %3086 = vrot.lane.b32.xlu1 %v5552_v27, %s5101_s24 }
0x156d   :  { %2670 = vrot.lane.b32.xlu0 %v5550_v25, %s5098_s21 }
0x15dc   :  { %v2430_v54 = vpop.xlane.xlu1 %2429 }
0x15dd   :  { %5032 = vrcp.f32 %v2430_v54 }
0x15e0   :  { %v2433_v55 = vpop.xlane.xlu0 %2432  ;;  %v2593_v60 = vpop.permute.xlu1 %2592 }
0x15e1   :  { %5034 = vrcp.f32 %v2433_v55 }
0x15e4   :  { %v2515_v58 = vpop.permute.xlu0 %2514  ;;  %v2591_v62 = vpop.permute.xlu1 %2590 }
0x15e7   :  { %v5033_v56 = vpop.eup %5032 }
0x15e8   :  { %v2436_v57 = vmul.f32 %v5033_v56, %v5029_v48  ;;  %v2671_v63 = vpop.permute.xlu0 %2670  ;;  %v2669_v0 = vpop.permute.xlu1 %2668 }
0x15ea   :  { %4696 = vmatmul.mubr.msk.f32.vlgmr.msra.gmra.mrb[40].mxu1 %vm237_vm4, %v2436_v57 }
0x15eb   :  { %v5035_v59 = vpop.eup %5034  ;;  %4699 = vmatpush3.msra.mxu1 %v2515_v58  ;;  %4700 = vmatprep.mubr.msk.f32.mxu1 %vm5095_vm3, %v5094_v44 }
0x15ec   :  { %v2437_v61 = vmul.f32 %v5035_v59, %v5031_v50  ;;  %4703 = vmatprep.subr.mxu1 %v5094_v44  ;;  %v3087_v5 = vpop.permute.xlu1 %3086 }
0x15ee   :  { %4701 = vmatmul.mubr.msk.f32.vlgmr.msra.gmra.mrb[42].mxu1 %vm237_vm4, %v2437_v61  ;;  %v4254_v61 = vld [vmem:[%s5828_s3 + $0x80] sm:$0xff] }
0x15ef   :  { %4705 = vmatprep.mubr.msk.f32.mxu1 %vm5095_vm3, %v5094_v44 }
0x15f2   :  { %4704 = vmatpush3.xpose.msk.msra.mxu1 %vm237_vm4, %v2593_v60  ;;  %v4255_v60 = vld [vmem:[%s5828_s3 + $0x88] sm:$0xff] }
0x15f3   :  { %4708 = vmatprep.subr.mxu1 %v5094_v44 }
0x15f5   :  { %4706 = vmatmul.mubr.msk.f32.vlgmr.msra.gmra.mrb[44].mxu1 %vm237_vm4, %v2591_v62 }
0x15f6   :  { %4709 = vmatpush3.xpose.msk.msra.mxu1 %vm237_vm4, %v2671_v63  ;;  %4710 = vmatprep.mubr.msk.f32.mxu1 %vm5095_vm3, %v5094_v44 }
0x15f7   :  { %4718 = vmatprep.subr.mxu1 %v5094_v44 }
0x15f9   :  { %4711 = vmatmul.mubr.msk.f32.vlgmr.msra.gmra.mrb[46].mxu1 %vm237_vm4, %v2669_v0 }
0x15fa   :  { %4720 = vmatprep.mubr.msk.f32.mxu1 %vm5095_vm3, %v5094_v44 }
0x16bd   :  { %v5606_v1 = vpop.f32.mrb[40].mxu1 }
0x16be   :  { %v4697_v2 = vpop.f32.mrb[41].mxu1 }
0x16c1   :  { %v5608_v3 = vpop.f32.mrb[42].mxu1 }
0x16c2   :  { %v4702_v4 = vpop.f32.mrb[43].mxu1 }
0x16c8   :  { %v2664_v7 = vpop.f32.mrb[44].mxu1 }
0x16c9   :  { %v4707_v8 = vpop.f32.mrb[45].mxu1  ;;  %v2746_v24 = vmul.f32 0.35355338, %v2664_v7 }
0x16cb   :  { %v2748_v26 = vsel %vm237_vm4, %v2746_v24, -inf }
0x16cc   :  { %v2742_v9 = vpop.f32.mrb[46].mxu1 }
0x16cd   :  { %v2747_v11 = vmul.f32 0.35355338, %v2742_v9  ;;  %v4712_v12 = vpop.f32.mrb[47].mxu1 }
0x16cf   :  { %v2751_v15 = vsel %vm237_vm4, %v2747_v11, -inf }
0x16d0   :  { %2752 = vmax.xlane.f32.xlu0 %v2751_v15 }
0x16e6   :  { %2846 = vrot.lane.b32.xlu0 %v5550_v25, %s5100_s23 }
0x16ea   :  { %3084 = vrot.lane.b32.xlu0 %v5552_v27, %s5102_s25 }
0x16ee   :  { %3162 = vrot.lane.b32.xlu0 %v5550_v25, %s5102_s25 }
0x175d   :  { %v2753_v16 = vpop.xlane.xlu0 %2752 }
0x175e   :  { %v2755_v52 = vsub.f32 %v2747_v11, %v2753_v16 }
0x1760   :  { %v2758_v18 = vmul.f32 1.442695, %v2755_v52 }
0x1761   :  { %v2847_v19 = vpop.permute.xlu0 %2846 }
0x1762   :  { %5036 = vpow2.f32 %v2758_v18  ;;  %4719 = vmatpush3.msra.mxu1 %v2847_v19  ;;  %v4256_v19 = vld [vmem:[%s5828_s3 + $0x90] sm:$0xff] }
0x1763   :  { %4733 = vmatprep.subr.mxu1 %v5094_v44 }
0x1765   :  { %v3085_v31 = vpop.permute.xlu0 %3084 }
0x1769   :  { %v3163_v33 = vpop.permute.xlu0 %3162 }
0x176c   :  { %v5037_v20 = vpop.eup %5036 }
0x176d   :  { %v2763_v47 = vsel %vm237_vm4, %v5037_v20, 0.0 }
0x176e   :  { %2764 = vadd.xlane.f32.xlu1 %v2763_v47 }
0x177f   :  { %3164 = vrot.lane.b32.xlu1 %v5550_v25, %s5101_s24 }
0x17a3   :  { %2749 = vmax.xlane.f32.xlu1 %v2748_v26 }
0x17fb   :  { %v2765_v29 = vpop.xlane.xlu1 %2764 }
0x17fc   :  { %5038 = vrcp.f32 %v2765_v29 }
0x17ff   :  { %v3165_v32 = vpop.permute.xlu1 %3164 }
0x1806   :  { %v5039_v46 = vpop.eup %5038 }
0x1807   :  { %v2769_v30 = vmul.f32 %v5039_v46, %v5037_v20 }
0x1809   :  { %4721 = vmatmul.mubr.msk.f32.vlgmr.msra.gmra.mrb[48].mxu1 %vm237_vm4, %v2769_v30 }
0x180a   :  { %4734 = vmatpush3.xpose.msk.msra.mxu1 %vm237_vm4, %v3087_v5  ;;  %4735 = vmatprep.mubr.msk.f32.mxu1 %vm5095_vm3, %v5094_v44 }
0x180b   :  { %4738 = vmatprep.subr.mxu1 %v5094_v44 }
0x180d   :  { %4736 = vmatmul.mubr.msk.f32.vlgmr.msra.gmra.mrb[50].mxu1 %vm237_vm4, %v3085_v31 }
0x180e   :  { %4739 = vmatpush3.xpose.msk.msra.mxu1 %vm237_vm4, %v3165_v32  ;;  %4740 = vmatprep.mubr.msk.f32.mxu1 %vm5095_vm3, %v5094_v44 }
0x180f   :  { %4748 = vmatprep.subr.mxu1 %v5094_v44 }
0x1811   :  { %4741 = vmatmul.mubr.msk.f32.vlgmr.msra.gmra.mrb[52].mxu1 %vm237_vm4, %v3163_v33 }
0x1812   :  { %4750 = vmatprep.mubr.msk.f32.mxu1 %vm5095_vm3, %v5094_v44 }
0x1830   :  { %v2750_v43 = vpop.xlane.xlu1 %2749 }
0x1831   :  { %v2754_v6 = vsub.f32 %v2746_v24, %v2750_v43 }
0x1833   :  { %v2756_v34 = vmul.f32 1.442695, %v2754_v6 }
0x1835   :  { %5040 = vpow2.f32 %v2756_v34 }
0x183f   :  { %v5041_v35 = vpop.eup %5040 }
0x1840   :  { %v2760_v36 = vsel %vm237_vm4, %v5041_v35, 0.0 }
0x1841   :  { %2761 = vadd.xlane.f32.xlu0 %v2760_v36 }
0x1857   :  { %2770 = vrot.lane.b32.xlu0 %v5552_v27, %s5100_s23 }
0x185b   :  { %3340 = vrot.lane.b32.xlu0 %v5550_v25, %s5103_s30 }
0x185f   :  { %3501 = vrot.lane.b32.xlu0 %v5552_v27, %s5104_s7 }
0x1863   :  { %3579 = vrot.lane.b32.xlu0 %v5550_v25, %s5104_s7 }
0x1867   :  { %3499 = vrot.lane.b32.xlu0 %v5552_v27, %s5105_s8 }
0x18ce   :  { %v2762_v37 = vpop.xlane.xlu0 %2761 }
0x18cf   :  { %5042 = vrcp.f32 %v2762_v37 }
0x18d2   :  { %v2771_v38 = vpop.permute.xlu0 %2770 }
0x18d3   :  { %4714 = vmatpush3.msra.mxu0 %v2771_v38 }
0x18d4   :  { %4723 = vmatprep.subr.mxu0 %v4255_v60 }
0x18d6   :  { %v3341_v39 = vpop.permute.xlu0 %3340 }
0x18d7   :  { %4749 = vmatpush3.msra.mxu1 %v3341_v39 }
0x18d8   :  { %4758 = vmatprep.subr.mxu1 %v5094_v44 }
0x18d9   :  { %v5043_v40 = vpop.eup %5042 }
0x18da   :  { %v2768_v41 = vmul.f32 %v5043_v40, %v5041_v35  ;;  %v3502_v47 = vpop.permute.xlu0 %3501 }
0x18dc   :  { %4716 = vmatmul.mubr.msk.f32.vlgmr.msra.gmra.mrb[10].mxu0 %vm237_vm4, %v2768_v41  ;;  %v2918_v48 = vpop.f32.mrb[48].mxu1 }
0x18dd   :  { %v4722_v49 = vpop.f32.mrb[49].mxu1  ;;  %4724 = vmatpush3.msra.mxu0 %v4255_v60 }
0x18de   :  { %4728 = vmatprep.subr.mxu0 %v4254_v61  ;;  %v3580_v26 = vpop.permute.xlu0 %3579 }
0x18e0   :  { %v3158_v50 = vpop.f32.mrb[50].mxu1 }
0x18e1   :  { %v3240_v53 = vmul.f32 0.35355338, %v3158_v50  ;;  %v4737_v54 = vpop.f32.mrb[51].mxu1 }
0x18e2   :  { %v3500_v29 = vpop.permute.xlu0 %3499 }
0x18e3   :  { %v3242_v55 = vsel %vm237_vm4, %v3240_v53, -inf }
0x18e4   :  { %3243 = vmax.xlane.f32.xlu1 %v3242_v55  ;;  %v3236_v56 = vpop.f32.mrb[52].mxu1 }
0x18e5   :  { %v3241_v57 = vmul.f32 0.35355338, %v3236_v56  ;;  %v4742_v58 = vpop.f32.mrb[53].mxu1 }
0x18e7   :  { %v3245_v59 = vsel %vm237_vm4, %v3241_v57, -inf }
0x18e8   :  { %3246 = vmax.xlane.f32.xlu1 %v3245_v59 }
0x1971   :  { %v3244_v62 = vpop.xlane.xlu1 %3243 }
0x1972   :  { %v3248_v63 = vsub.f32 %v3240_v53, %v3244_v62 }
0x1974   :  { %v3250_v0 = vmul.f32 1.442695, %v3248_v63 }
0x1975   :  { %v3247_v2 = vpop.xlane.xlu1 %3246 }
0x1976   :  { %5044 = vpow2.f32 %v3250_v0  ;;  %v3249_v4 = vsub.f32 %v3241_v57, %v3247_v2 }
0x1978   :  { %v3252_v7 = vmul.f32 1.442695, %v3249_v4 }
0x197a   :  { %5046 = vpow2.f32 %v3252_v7 }
0x1980   :  { %v5045_v8 = vpop.eup %5044 }
0x1981   :  { %v3254_v9 = vsel %vm237_vm4, %v5045_v8, 0.0 }
0x1982   :  { %3255 = vadd.xlane.f32.xlu1 %v3254_v9 }
0x1984   :  { %v5047_v11 = vpop.eup %5046 }
0x1985   :  { %v3257_v12 = vsel %vm237_vm4, %v5047_v11, 0.0 }
0x1986   :  { %3258 = vadd.xlane.f32.xlu1 %v3257_v12 }
0x1997   :  { %3264 = vrot.lane.b32.xlu1 %v5552_v27, %s5103_s30 }
0x199b   :  { %3577 = vrot.lane.b32.xlu1 %v5550_v25, %s5105_s8 }
0x19af   :  { %v2842_v15 = vpop.f32.mrb[10].mxu0 }
0x19b0   :  { %v4717_v16 = vpop.f32.mrb[11].mxu0  ;;  %4725 = vmatprep.mubr.msk.f32.mxu0 %vm237_vm4, %v2842_v15 }
0x19b1   :  { %4726 = vmatmul.mubr.msk.f32.vlgmr.msra.gmra.mrb[12].mxu0 %vm237_vm4, %v2918_v48 }
0x19b2   :  { %4730 = vmatprep.mubr.msk.f32.mxu0 %vm237_vm4, %v5606_v1  ;;  %4729 = vmatpush3.msra.mxu0 %v4254_v61  ;;  %v4257_v61 = vld [vmem:[%s5828_s3 + $0x98] sm:$0xff] }
0x19b3   :  { %4743 = vmatprep.subr.mxu0 %v5094_v44 }
0x19b9   :  { %4731 = vmatmul.mubr.msk.f32.vlgmr.msra.gmra.mrb[12].mxu0 %vm237_vm4, %v5608_v3 }
0x19ba   :  { %4745 = vmatprep.mubr.msk.f32.mxu0 %vm5095_vm3, %v5094_v44 }
0x1a0f   :  { %v3256_v52 = vpop.xlane.xlu1 %3255 }
0x1a10   :  { %5048 = vrcp.f32 %v3256_v52 }
0x1a13   :  { %v3259_v18 = vpop.xlane.xlu1 %3258 }
0x1a14   :  { %5050 = vrcp.f32 %v3259_v18 }
0x1a17   :  { %v3265_v20 = vpop.permute.xlu1 %3264 }
0x1a18   :  { %4744 = vmatpush3.msra.mxu0 %v3265_v20 }
0x1a19   :  { %4753 = vmatprep.subr.mxu0 %v4256_v19 }
0x1a1a   :  { %v5049_v1 = vpop.eup %5048 }
0x1a1b   :  { %v3262_v24 = vmul.f32 %v5049_v1, %v5045_v8  ;;  %v3578_v33 = vpop.permute.xlu1 %3577  ;;  %v3919_v8 = vrot.slane %v5545_v23, %v1893_v17 }
0x1a1d   :  { %4746 = vmatmul.mubr.msk.f32.vlgmr.msra.gmra.mrb[14].mxu0 %vm237_vm4, %v3262_v24 }
0x1a1e   :  { %v5051_v3 = vpop.eup %5050  ;;  %4754 = vmatpush3.msra.mxu0 %v4256_v19 }
0x1a1f   :  { %v3263_v5 = vmul.f32 %v5051_v3, %v5047_v11  ;;  %4763 = vmatprep.subr.mxu0 %v5094_v44 }
0x1a21   :  { %4751 = vmatmul.mubr.msk.f32.vlgmr.msra.gmra.mrb[54].mxu1 %vm237_vm4, %v3263_v5 }
0x1a22   :  { %4759 = vmatpush3.xpose.msk.msra.mxu1 %vm237_vm4, %v3502_v47  ;;  %4760 = vmatprep.mubr.msk.f32.mxu1 %vm5095_vm3, %v5094_v44 }
0x1a23   :  { %4768 = vmatprep.subr.mxu1 %v5094_v44 }
0x1a25   :  { %4761 = vmatmul.mubr.msk.f32.vlgmr.msra.gmra.mrb[56].mxu1 %vm237_vm4, %v3500_v29  ;;  %v4258_v29 = vld [vmem:[%s5828_s3 + $0xa0] sm:$0xff] }
0x1a26   :  { %4770 = vmatprep.mubr.msk.f32.mxu1 %vm5095_vm3, %v5094_v44 }
0x1af0   :  { %v3336_v46 = vpop.f32.mrb[14].mxu0 }
0x1af1   :  { %v4747_v30 = vpop.f32.mrb[15].mxu0  ;;  %4755 = vmatprep.mubr.msk.f32.mxu0 %vm237_vm4, %v3336_v46  ;;  %v4259_v46 = vld [vmem:[%s5828_s3 + $0xa8] sm:$0xff] }
0x1af2   :  { %v4917_v30 = vpack.c.bf16 %v4259_v46, %v4258_v29 }
0x1af4   :  { %v3412_v31 = vpop.f32.mrb[54].mxu1 }
0x1af5   :  { %v4752_v32 = vpop.f32.mrb[55].mxu1  ;;  %4756 = vmatmul.mubr.msk.f32.vlgmr.msra.gmra.mrb[12].mxu0 %vm237_vm4, %v3412_v31  ;;  %v4260_v31 = vld [vmem:[%s5828_s3 + $0xb0] sm:$0xff] }
0x1af6   :  { %4764 = vmatpush3.xpose.msk.msra.mxu0 %vm237_vm4, %v3580_v26  ;;  %4765 = vmatprep.mubr.msk.f32.mxu0 %vm5095_vm3, %v5094_v44  ;;  %v4261_v32 = vld [vmem:[%s5828_s3 + $0xb8] sm:$0xff] }
0x1af7   :  { %4773 = vmatprep.subr.mxu0 %v5094_v44 }
0x1af8   :  { %v3573_v43 = vpop.f32.mrb[56].mxu1 }
0x1af9   :  { %v3655_v6 = vmul.f32 0.35355338, %v3573_v43  ;;  %v4762_v34 = vpop.f32.mrb[57].mxu1  ;;  %4766 = vmatmul.mubr.msk.f32.vlgmr.msra.gmra.mrb[16].mxu0 %vm237_vm4, %v3578_v33  ;;  %v4921_v33 = vpack.c.bf16 %v4261_v32, %v4260_v31  ;;  %v4298_v43 = vld [vmem:[%s5829_s4 + $0x80] sm:$0xff] }
0x1afa   :  { %4775 = vmatprep.mubr.msk.f32.mxu0 %vm5095_vm3, %v5094_v44  ;;  %v4300_v34 = vld [vmem:[%s5829_s4 + $0x90] sm:$0xff] }
0x1afb   :  { %v3657_v35 = vsel %vm237_vm4, %v3655_v6, -inf }
0x1afc   :  { %3658 = vmax.xlane.f32.xlu0 %v3657_v35 }
0x1b89   :  { %v3659_v36 = vpop.xlane.xlu0 %3658 }
0x1b8a   :  { %v3663_v37 = vsub.f32 %v3655_v6, %v3659_v36  ;;  %v4299_v6 = vld [vmem:[%s5829_s4 + $0x88] sm:$0xff]  ;;  %v4301_v36 = vld [vmem:[%s5829_s4 + $0x98] sm:$0xff] }
0x1b8b   :  { %v4925_v35 = vpack.c.bf16 %v4299_v6, %v4298_v43 }
0x1b8c   :  { %v3665_v38 = vmul.f32 1.442695, %v3663_v37  ;;  %v4929_v37 = vpack.c.bf16 %v4301_v36, %v4300_v34 }
0x1b8e   :  { %5052 = vpow2.f32 %v3665_v38  ;;  %v4302_v38 = vld [vmem:[%s5829_s4 + $0xa0] sm:$0xff] }
0x1b98   :  { %v5053_v39 = vpop.eup %5052 }
0x1b99   :  { %v3669_v40 = vsel %vm237_vm4, %v5053_v39, 0.0 }
0x1b9a   :  { %3670 = vadd.xlane.f32.xlu0 %v3669_v40 }
0x1bcc   :  { %v3651_v41 = vpop.f32.mrb[16].mxu0 }
0x1bcd   :  { %v3656_v48 = vmul.f32 0.35355338, %v3651_v41  ;;  %v4767_v49 = vpop.f32.mrb[17].mxu0  ;;  %v4304_v41 = vld [vmem:[%s5829_s4 + $0xb0] sm:$0xff] }
0x1bcf   :  { %v3660_v50 = vsel %vm237_vm4, %v3656_v48, -inf }
0x1bd0   :  { %3661 = vmax.xlane.f32.xlu1 %v3660_v50  ;;  %v4306_v50 = vld [vmem:[%s5829_s4 + $0xc0] sm:$0xff] }
0x1be1   :  { %3679 = vrot.lane.b32.xlu1 %v5552_v27, %s5106_s11 }
0x1c27   :  { %v3671_v44 = vpop.xlane.xlu0 %3670 }
0x1c28   :  { %5054 = vrcp.f32 %v3671_v44  ;;  %v4307_v44 = vld [vmem:[%s5829_s4 + $0xc8] sm:$0xff] }
0x1c32   :  { %v5055_v54 = vpop.eup %5054 }
0x1c33   :  { %v3677_v57 = vmul.f32 %v5055_v54, %v5053_v39  ;;  %v4303_v39 = vld [vmem:[%s5829_s4 + $0xa8] sm:$0xff]  ;;  %v4308_v54 = vld [vmem:[%s5829_s4 + $0xd0] sm:$0xff] }
0x1c34   :  { %v4933_v40 = vpack.c.bf16 %v4303_v39, %v4302_v38 }
0x1c5d   :  { %v3662_v53 = vpop.xlane.xlu1 %3661 }
0x1c5e   :  { %v3664_v55 = vsub.f32 %v3656_v48, %v3662_v53  ;;  %v4305_v48 = vld [vmem:[%s5829_s4 + $0xb8] sm:$0xff]  ;;  %v4941_v53 = vpack.c.bf16 %v4307_v44, %v4306_v50  ;;  %v4174_v50 = vrot.slane %v5545_v23, %v2148_v51 }
0x1c5f   :  { %v4937_v49 = vpack.c.bf16 %v4305_v48, %v4304_v41 }
0x1c60   :  { %v3667_v56 = vmul.f32 1.442695, %v3664_v55  ;;  %v4309_v55 = vld [vmem:[%s5829_s4 + $0xd8] sm:$0xff] }
0x1c61   :  { %v3680_v58 = vpop.permute.xlu1 %3679 }
0x1c62   :  { %5056 = vpow2.f32 %v3667_v56  ;;  %4769 = vmatpush3.msra.mxu1 %v3680_v58  ;;  %v4945_v56 = vpack.c.bf16 %v4309_v55, %v4308_v54  ;;  %v4311_v58 = vld [vmem:[%s5829_s4 + $0xe8] sm:$0xff]  ;;  %v4180_v55 = vrot.slane %v5545_v23, %v2154_v10 }
0x1c63   :  { %4771 = vmatmul.mubr.msk.f32.vlgmr.msra.gmra.mrb[58].mxu1 %vm237_vm4, %v3677_v57  ;;  %4918 = vmatprep.subr.bf16.mxu1 %v4917_v30  ;;  %v4310_v57 = vld [vmem:[%s5829_s4 + $0xe0] sm:$0xff] }
0x1c64   :  { %4920 = vmatpush3.bf16.msra.mxu1 %v4917_v30 }
0x1c65   :  { %4922 = vmatprep.subr.bf16.mxu1 %v4921_v33 }
0x1c68   :  { %4924 = vmatpush3.bf16.msra.mxu1 %v4921_v33 }
0x1c6c   :  { %v5057_v59 = vpop.eup %5056 }
0x1c6d   :  { %v3672_v60 = vsel %vm237_vm4, %v5057_v59, 0.0 }
0x1c6e   :  { %3673 = vadd.xlane.f32.xlu0 %v3672_v60 }
0x1c84   :  { %3755 = vrot.lane.b32.xlu0 %v5550_v25, %s5106_s11 }
0x1cfb   :  { %v3674_v27 = vpop.xlane.xlu0 %3673 }
0x1cfc   :  { %5058 = vrcp.f32 %v3674_v27 }
0x1cff   :  { %v3756_v62 = vpop.permute.xlu0 %3755 }
0x1d00   :  { %4774 = vmatpush3.msra.mxu0 %v3756_v62 }
0x1d01   :  { %4778 = vmatprep.subr.mxu0 %v4257_v61 }
0x1d06   :  { %v5059_v63 = vpop.eup %5058 }
0x1d07   :  { %v3678_v0 = vmul.f32 %v5059_v63, %v5057_v59  ;;  %v4949_v59 = vpack.c.bf16 %v4311_v58, %v4310_v57 }
0x1d09   :  { %4776 = vmatmul.mubr.msk.f32.vlgmr.msra.gmra.mrb[18].mxu0 %vm237_vm4, %v3678_v0 }
0x1d0a   :  { %4779 = vmatpush3.msra.mxu0 %v4257_v61 }
0x1d0b   :  { %4926 = vmatprep.subr.bf16.mxu0 %v4925_v35 }
0x1d36   :  { %v3751_v2 = vpop.f32.mrb[58].mxu1 }
0x1d37   :  { %v4772_v4 = vpop.f32.mrb[59].mxu1  ;;  %4780 = vmatprep.mubr.msk.f32.mxu0 %vm237_vm4, %v3751_v2  ;;  %v3951_v2 = vrot.slane %v5545_v23, %v1926_v13  ;;  %v4312_v13 = vld [vmem:[%s5829_s4 + $0xf0] sm:$0xff] }
0x1ddc   :  { %v3827_v7 = vpop.f32.mrb[18].mxu0 }
0x1ddd   :  { %v4777_v25 = vpop.f32.mrb[19].mxu0  ;;  %4781 = vmatmul.mubr.msk.f32.vlgmr.msra.gmra.mrb[12].mxu0 %vm237_vm4, %v3827_v7 }
0x1dde   :  { %4928 = vmatpush3.bf16.msra.mxu0 %v4925_v35 }
0x1ddf   :  { %4930 = vmatprep.subr.bf16.mxu0 %v4929_v37 }
0x1de2   :  { %4932 = vmatpush3.bf16.msra.mxu0 %v4929_v37 }
0x1de3   :  { %4934 = vmatprep.subr.bf16.mxu0 %v4933_v40 }
0x1de6   :  { %4936 = vmatpush3.bf16.msra.mxu0 %v4933_v40 }
0x1de7   :  { %4938 = vmatprep.subr.bf16.mxu0 %v4937_v49 }
0x1dea   :  { %4940 = vmatpush3.bf16.msra.mxu0 %v4937_v49 }
0x1deb   :  { %4942 = vmatprep.subr.bf16.mxu0 %v4941_v53 }
0x1dee   :  { %4944 = vmatpush3.bf16.msra.mxu0 %v4941_v53 }
0x1def   :  { %4946 = vmatprep.subr.bf16.mxu0 %v4945_v56 }
0x1df2   :  { %4948 = vmatpush3.bf16.msra.mxu0 %v4945_v56 }
0x1df3   :  { %4950 = vmatprep.subr.bf16.mxu0 %v4949_v59 }
0x1df6   :  { %4952 = vmatpush3.bf16.msra.mxu0 %v4949_v59 }
0x1eb0   :  { %v4782_v9 = vpop.f32.mrb[12].mxu0 }
0x1eb1   :  { %v3915_v11 = vadd.f32 %v4782_v9, %v5534_v22  ;;  %v3903_v12 = vpop.f32.mrb[13].mxu0  ;;  %v3957_v9 = vrot.slane %v5545_v23, %v1932_v14  ;;  %v3963_v14 = vrot.slane %v5545_v23, %v1938_v28 }
0x1eb2   :  { %v3914_v15 = vadd.f32 %v3903_v12, %v5532_v21 }
0x1eb3   :  { %v3921_v16 = vadd.f32 %v3919_v8, %v3915_v11 }
0x1eb4   :  { %v3920_v52 = vadd.f32 %v3919_v8, %v3914_v15 }
0x1eb5   :  { %v3925_v18 = vsel %vm152_vm2, %v3921_v16, 0.0 }
0x1eb6   :  { %3926 = vadd.xlane.f32.xlu0 %v3925_v18  ;;  %v3922_v19 = vsel %vm152_vm2, %v3920_v52, 0.0 }
0x1eb7   :  { %3923 = vadd.xlane.f32.xlu1 %v3922_v19 }
0x1f43   :  { %v3927_v20 = vpop.xlane.xlu0 %3926 }
0x1f44   :  { %v3929_v47 = vmul.f32 0.03125, %v3927_v20  ;;  %v3924_v1 = vpop.xlane.xlu1 %3923 }
0x1f45   :  { %v3928_v24 = vmul.f32 0.03125, %v3924_v1 }
0x1f46   :  { %v5715_v3 = vsub.f32 %v3921_v16, %v3929_v47 }
0x1f47   :  { %v5717_v17 = vsub.f32 %v3920_v52, %v3928_v24  ;;  %v4313_v52 = vld [vmem:[%s5829_s4 + $0xf8] sm:$0xff]  ;;  %s5107_s4 = smov [#allocation2]  }
0x1f48   :  { %v3933_v22 = vmul.f32 %v5715_v3, %v5715_v3  ;;  %v4953_v18 = vpack.c.bf16 %v4313_v52, %v4312_v13  ;;  %s4190_s27 = sshll.u32 %s5107_s4, 4  ;;  %s4191_s27 = int_to_ptr.vmem [resolvable:$true] %s4190_s27 }
0x1f49   :  { %v3932_v21 = vmul.f32 %v5717_v17, %v5717_v17  ;;  %s5068_s28 = scalar_lea.vmem %s4191_s27, 256  ;;  %p5073_p1 = scmp.lt.s32.totalorder %s4191_s27, %s4191_s27 }
0x1f4a   :  { %v3937_v26 = vsel %vm152_vm2, %v3933_v22, 0.0  ;;  %4954 = vmatprep.subr.bf16.mxu0 %v4953_v18  ;;  %p5069_p0 = scmp.ne.s32.totalorder %s4191_s27, %s5068_s28  ;;  %p5074_p2 = scmp.lt.s32.totalorder %s5068_s28, %s5068_s28 }
0x1f4b   :  { %3938 = vadd.xlane.f32.xlu0 %v3937_v26  ;;  %v3934_v5 = vsel %vm152_vm2, %v3932_v21, 0.0  ;;  %4956 = vmatpush3.bf16.msra.mxu0 %v4953_v18 }
0x1f4c   :  { %3935 = vadd.xlane.f32.xlu1 %v3934_v5  ;;  %p5075_p3 = por %p5074_p2, %p5073_p1 }
0x1f4e   :  { %p5076_p4 = pnand %p5075_p3, %p5069_p0 }
0x1fd8   :  { %v3939_v60 = vpop.xlane.xlu0 %3938 }
0x1fd9   :  { %v3941_v27 = vmul.f32 0.03125, %v3939_v60  ;;  %v3936_v61 = vpop.xlane.xlu1 %3935 }
0x1fda   :  { %v3940_v62 = vmul.f32 0.03125, %v3936_v61 }
0x1fdb   :  { %v3943_v63 = vadd.f32 1e-05, %v3941_v27 }
0x1fdc   :  { %v3942_v0 = vadd.f32 1e-05, %v3940_v62 }
0x1fdd   :  { %5060 = vrsqrt.f32 %v3943_v63 }
0x1fde   :  { %5062 = vrsqrt.f32 %v3942_v0 }
0x1fe7   :  { %v5061_v4 = vpop.eup %5060 }
0x1fe8   :  { %v5063_v7 = vpop.eup %5062  ;;  %v3947_v25 = vmul.f32 %v5061_v4, %v5715_v3 }
0x1fe9   :  { %v3946_v8 = vmul.f32 %v5063_v7, %v5717_v17  ;;  %v4067_v17 = vrot.slane %v5545_v23, %v2041_v42 }
0x1fea   :  { %v3953_v11 = vmul.f32 %v3951_v2, %v3947_v25 }
0x1feb   :  { %v3952_v12 = vmul.f32 %v3951_v2, %v3946_v8 }
0x1fec   :  { %v3959_v16 = vadd.f32 %v3957_v9, %v3953_v11 }
0x1fed   :  { %v3958_v15 = vadd.f32 %v3957_v9, %v3952_v12 }
0x1fef   :  { %4791 = vmatprep.mubr.msk.f32.mxu1 %vm152_vm2, %v3958_v15 }
0x1ff0   :  { %4792 = vmatmul.mubr.msk.f32.vlgmr.msra.gmra.mrb[60].mxu1 %vm152_vm2, %v3959_v16 }
0x20c3   :  { %v4793_v19 = vpop.f32.mrb[60].mxu1 }
0x20c4   :  { %v4042_v20 = vadd.f32 %v4793_v19, %v3963_v14  ;;  %v4036_v47 = vpop.f32.mrb[61].mxu1 }
0x20c5   :  { %v4037_v1 = vadd.f32 %v4036_v47, %v3963_v14 }
0x20c6   :  { %v4046_v3 = vmax.f32 %v4042_v20, 0.0 }
0x20c7   :  { %v4045_v24 = vmax.f32 %v4037_v1, 0.0 }
0x20c9   :  { %4826 = vmatprep.mubr.f32.mxu0 %v4045_v24 }
0x20ca   :  { %4827 = vmatmul.mubr.f32.vlgmr.msra.gmra.mrb[20].mxu0 %v4046_v3 }
0x219d   :  { %v4828_v22 = vpop.f32.mrb[20].mxu0 }
0x219e   :  { %v4140_v21 = vadd.f32 %v4828_v22, %v4067_v17  ;;  %v4134_v26 = vpop.f32.mrb[21].mxu0 }
0x219f   :  { %v4135_v5 = vadd.f32 %v4134_v26, %v4067_v17 }
0x21a0   :  { %v4144_v29 = vadd.f32 %v4140_v21, %v3959_v16 }
0x21a1   :  { %v4143_v46 = vadd.f32 %v4135_v5, %v3958_v15 }
0x21a2   :  { %v4148_v28 = vsel %vm152_vm2, %v4144_v29, 0.0 }
0x21a3   :  { %4149 = vadd.xlane.f32.xlu0 %v4148_v28  ;;  %v4145_v30 = vsel %vm152_vm2, %v4143_v46, 0.0 }
0x21a4   :  { %4146 = vadd.xlane.f32.xlu1 %v4145_v30 }
0x2230   :  { %v4150_v31 = vpop.xlane.xlu0 %4149 }
0x2231   :  { %v4152_v32 = vmul.f32 0.03125, %v4150_v31  ;;  %v4147_v33 = vpop.xlane.xlu1 %4146 }
0x2232   :  { %v4151_v43 = vmul.f32 0.03125, %v4147_v33 }
0x2233   :  { %v4154_v6 = vsub.f32 %v4144_v29, %v4152_v32 }
0x2234   :  { %v4153_v34 = vsub.f32 %v4143_v46, %v4151_v43 }
0x2235   :  { %v4156_v35 = vmul.f32 %v4154_v6, %v4154_v6 }
0x2236   :  { %v4155_v42 = vmul.f32 %v4153_v34, %v4153_v34 }
0x2237   :  { %v4160_v36 = vsel %vm152_vm2, %v4156_v35, 0.0 }
0x2238   :  { %4161 = vadd.xlane.f32.xlu0 %v4160_v36  ;;  %v4157_v37 = vsel %vm152_vm2, %v4155_v42, 0.0 }
0x2239   :  { %4158 = vadd.xlane.f32.xlu1 %v4157_v37 }
0x22c5   :  { %v4162_v38 = vpop.xlane.xlu0 %4161 }
0x22c6   :  { %v4164_v39 = vmul.f32 0.03125, %v4162_v38  ;;  %v4159_v40 = vpop.xlane.xlu1 %4158 }
0x22c7   :  { %v4163_v41 = vmul.f32 0.03125, %v4159_v40 }
0x22c8   :  { %v4166_v48 = vadd.f32 1e-05, %v4164_v39 }
0x22c9   :  { %v4165_v49 = vadd.f32 1e-05, %v4163_v41 }
0x22ca   :  { %5064 = vrsqrt.f32 %v4166_v48 }
0x22cb   :  { %5066 = vrsqrt.f32 %v4165_v49 }
0x22d4   :  { %v5065_v44 = vpop.eup %5064 }
0x22d5   :  { %v5067_v53 = vpop.eup %5066  ;;  %v4170_v54 = vmul.f32 %v5065_v44, %v4154_v6 }
0x22d6   :  { %v4169_v56 = vmul.f32 %v5067_v53, %v4153_v34 }
0x22d7   :  { %v4176_v57 = vmul.f32 %v4174_v50, %v4170_v54 }
0x22d8   :  { %v4175_v58 = vmul.f32 %v4174_v50, %v4169_v56 }
0x22d9   :  { %v4182_v59 = vadd.f32 %v4180_v55, %v4176_v57 }
0x22da   :  { %v4181_v60 = vadd.f32 %v4180_v55, %v4175_v58 }
0x22db   :  { %4184 = vst.msk [vmem:[#allocation2 + $0x8] sm:$0xff] %vm152_vm2, %v4182_v59 }
0x22dc   :  { %4183 = vst.msk [vmem:[#allocation2] sm:$0xff] %vm152_vm2, %v4181_v60 }
0x22dd   :  { %5079 = shalt.err (!%p5076_p4)
}
0x22de   :  { %s5080_s3 = scalar_lea.hbm %s5831_s6, 256 }
0x22df   :  { %p5081_p5 = scmp.ne.s32.totalorder %s5831_s6, %s5080_s3  ;;  %p5084_p6 = scmp.lt.u32.totalorder %s5080_s3, %s5831_s6 }
0x22e1   :  { %p5086_p7 = pnand %p5084_p6, %p5081_p5 }
0x22e3   :  { %5089 = shalt.err (!%p5086_p7)
}
0x22e4   :  { %s5108_s14 = smov 128   ;;  %s5109_s5 = smov 8  }
0x22e5   :  { %4196 = dma.vmem_to_hbm [thread:$0]  %s4191_s27, 256, %s5831_s6, [#allocation3], %s5108_s14, %s5108_s14, %s5109_s5  }
0x22e6   :  { %5090 = dma.done.wait [#allocation3], 256  }
0x22e7   :  { %5091 = vsyncadd [#allocation3], 4294967040 }
0x22e8   :  { %4200 = vsyncpa [#allocation3], 1 }

</bundles_post_ra>
